<compile_context>
chip_gen: v7x
topology: tpu7x:2x2x1
jax: 0.10.0
libtpu: 0.0.40
codegen_flags: <defaults>
</compile_context>

<pallas_src>
import numpy as np
import jax
import jax.numpy as jnp
from jax import lax
from jax.experimental import pallas as pl
from jax.experimental.pallas import tpu as pltpu

# ---- synthetic hyperparameters (small, consistent with the module) ----------
VOCAB_SIZE = 16
EMBEDDING_SIZE = 8
SEQUENCE_LENGTH = 8
NUM_FILTERS = 4
FILTER_SIZES = (2, 3, 4)
NUM_CLASSES = 2
NUM_FILTERS_TOTAL = NUM_FILTERS * len(FILTER_SIZES)
BATCH = 2

FS_MAX = max(FILTER_SIZES)
FS_MIN = min(FILTER_SIZES)
N_POS_MAX = SEQUENCE_LENGTH - FS_MIN + 1               # 7 valid positions (fs=2)
N_POS_PAD = ((N_POS_MAX + 7) // 8) * 8                 # 8  (sublane-friendly)
SEQ_PAD = N_POS_PAD - 1 + FS_MAX                       # 11 (every shift is a full slice)
SENTINEL_ID = VOCAB_SIZE                               # padded tokens -> zero embedding row
V_PAD = ((VOCAB_SIZE + 1 + 127) // 128) * 128          # 128: lane-dense one-hot K
NF_PAD = 128                                           # lane-dense conv N / pooled width
NC_PAD = 128                                           # lane-dense output width
NEG_MASK = -1e30                                       # finite "-inf" for the pooling mask

# Matmul-input dtype. bf16 ~2x MXU throughput on v6e/v7x and halves VMEM/HBM
# bytes (accumulation stays f32 via preferred_element_type); needs atol ~2e-2.
MATMUL_DTYPE = jnp.float32

# ---- batch tiling -----------------------------------------------------------
B_TILE_TARGET = 128   # sweep 128-512 at real batch sizes; M = B_TILE*N_POS_PAD >= 1024
B_TILE_MIN = 8
# Per-step VMEM at B_TILE=128, f32: id tile ~2x64 KiB (double-buffered), one-hot
# temp ~720 KiB, scores ~512 KiB, output ~2x64 KiB, resident weights ~200 KiB —
# well under the 32 MiB limit below (and under v7x's 64 MiB physical VMEM).
VMEM_LIMIT_BYTES = 32 * 1024 * 1024   # v5e's scoped default is only 16 MiB


def _choose_batch_tiling(batch):
    """Pick (B_TILE, n_steps). Big tiles fill the MXU and amortize per-step
    overhead; but keep >= 2 grid steps so v7x's 2 TensorCores both get work."""
    bt = B_TILE_TARGET
    while bt > B_TILE_MIN and (batch + bt - 1) // bt < 2:
        bt //= 2
    n_steps = max(2, (batch + bt - 1) // bt)
    return bt, n_steps


def textcnn_kernel(x_ref, wemb_ref, wconv_ref, bconv_ref, mask_ref,
                   wout_ref, bout_ref, out_ref):
    """Fused embedding + shift-accumulate conv + ReLU + masked max-pool + linear."""
    bt, s = x_ref.shape                                  # (B_TILE, SEQ_PAD)

    # ---- embedding gather fused as a one-hot matmul on the MXU ----
    # (sentinel / padded ids hit zero table rows -> zero embeddings for free)
    x = x_ref[...]                                                     # [bt, SEQ_PAD] int32
    onehot = (x[:, :, None] ==
              lax.broadcasted_iota(jnp.int32, (bt, s, V_PAD), 2)
              ).astype(MATMUL_DTYPE)                                   # [bt, SEQ_PAD, V_PAD]
    emb = jnp.einsum('bsv,ve->bse', onehot,
                     wemb_ref[...].astype(MATMUL_DTYPE),
                     preferred_element_type=jnp.float32)               # [bt, SEQ_PAD, E]

    # ---- conv for all filter sizes via shift-and-accumulate (no im2col concat) ----
    # wconv_ref[j] is the lane-dense [E, NF_PAD] tap-j weight (zero for j >= fs
    # of a branch and for padded lanes), so one sum over FS_MAX taps covers all
    # three branches in a single lane-dense accumulator.
    scores = None
    for j in range(FS_MAX):
        chunk = emb[:, j:j + N_POS_PAD, :].astype(MATMUL_DTYPE)        # [bt, P_pad, E]
        part = jnp.einsum('bpe,ef->bpf', chunk,
                          wconv_ref[j].astype(MATMUL_DTYPE),
                          preferred_element_type=jnp.float32)          # [bt, P_pad, NF_PAD]
        scores = part if scores is None else scores + part
    scores = jnp.maximum(scores + bconv_ref[...], 0.0)                 # bias once, ReLU

    # ---- single masked max over positions (replaces per-branch slice+concat) ----
    # mask_ref: 0 on valid (position, lane) pairs, -1e30 on invalid; padded
    # lanes are all-valid so pooled stays a finite 0 there.
    pooled = jnp.max(scores + mask_ref[...], axis=1)                   # [bt, NF_PAD]

    # ---- final linear into a lane-dense (128-wide, zero-padded) output ----
    out_ref[...] = (jnp.dot(pooled.astype(MATMUL_DTYPE),
                            wout_ref[...].astype(MATMUL_DTYPE),
                            preferred_element_type=jnp.float32)
                    + bout_ref[...])


def _pack_params(W_embed, conv_ws, conv_bs, Weight, Bias):
    """Pre-pack all parameters into lane-dense, zero-padded resident operands."""
    # Embedding table padded to V_PAD rows; sentinel row (and all padded rows) zero.
    w_emb = jnp.zeros((V_PAD, EMBEDDING_SIZE), jnp.float32)
    w_emb = w_emb.at[:VOCAB_SIZE].set(W_embed.astype(jnp.float32))

    # Conv filters packed by window offset j: w_conv[j, e, f] (zero for j >= fs
    # of branch(f) and for padded lanes f >= NUM_FILTERS_TOTAL).
    w_conv = jnp.zeros((FS_MAX, EMBEDDING_SIZE, NF_PAD), jnp.float32)
    for i, (fs, w) in enumerate(zip(FILTER_SIZES, conv_ws)):
        w_conv = w_conv.at[:fs, :, i * NUM_FILTERS:(i + 1) * NUM_FILTERS].set(
            jnp.transpose(w.astype(jnp.float32), (1, 2, 0)))           # [fs, E, NF]
    b_conv = jnp.zeros((1, NF_PAD), jnp.float32)
    b_conv = b_conv.at[0, :NUM_FILTERS_TOTAL].set(
        jnp.concatenate([b.astype(jnp.float32) for b in conv_bs]))

    # Additive pooling mask: 0 = valid, NEG_MASK = invalid position for that
    # lane's branch. Padded lanes stay all-valid (pooled value = 0, finite).
    mask = np.zeros((N_POS_PAD, NF_PAD), np.float32)
    for i, fs in enumerate(FILTER_SIZES):
        n_pos = SEQUENCE_LENGTH - fs + 1
        mask[n_pos:, i * NUM_FILTERS:(i + 1) * NUM_FILTERS] = NEG_MASK
    mask_bias = jnp.asarray(mask)

    # Linear layer padded to [NF_PAD, NC_PAD]; padded rows/cols are zero.
    w_out = jnp.zeros((NF_PAD, NC_PAD), jnp.float32)
    w_out = w_out.at[:NUM_FILTERS_TOTAL, :NUM_CLASSES].set(Weight.T.astype(jnp.float32))
    b_out = jnp.zeros((1, NC_PAD), jnp.float32)
    b_out = b_out.at[0, :NUM_CLASSES].set(Bias.astype(jnp.float32))
    return w_emb, w_conv, b_conv, mask_bias, w_out, b_out


def textcnn_forward(X, W_embed, conv_ws, conv_bs, Weight, Bias):
    b = X.shape[0]
    bt, n_steps = _choose_batch_tiling(b)
    b_pad = bt * n_steps

    # Pad batch rows AND the sequence axis with the sentinel id (zero embedding
    # row): no in-kernel zero-pad concat, padding rides the id DMA for free.
    x_pad = jnp.full((b_pad, SEQ_PAD), SENTINEL_ID, dtype=jnp.int32)
    x_pad = x_pad.at[:b, :SEQUENCE_LENGTH].set(X.astype(jnp.int32))

    w_emb, w_conv, b_conv, mask_bias, w_out, b_out = _pack_params(
        W_embed, conv_ws, conv_bs, Weight, Bias)

    out = pl.pallas_call(
        textcnn_kernel,
        out_shape=jax.ShapeDtypeStruct((b_pad, NC_PAD), jnp.float32),
        grid=(n_steps,),
        in_specs=[
            pl.BlockSpec((bt, SEQ_PAD), lambda i: (i, 0)),                       # token ids
            pl.BlockSpec((V_PAD, EMBEDDING_SIZE), lambda i: (0, 0)),             # emb table
            pl.BlockSpec((FS_MAX, EMBEDDING_SIZE, NF_PAD), lambda i: (0, 0, 0)),  # conv taps
            pl.BlockSpec((1, NF_PAD), lambda i: (0, 0)),                         # conv bias
            pl.BlockSpec((N_POS_PAD, NF_PAD), lambda i: (0, 0)),                 # pool mask
            pl.BlockSpec((NF_PAD, NC_PAD), lambda i: (0, 0)),                    # linear W^T
            pl.BlockSpec((1, NC_PAD), lambda i: (0, 0)),                         # Bias
        ],
        out_specs=pl.BlockSpec((bt, NC_PAD), lambda i: (i, 0)),
        compiler_params=pltpu.CompilerParams(
            dimension_semantics=("parallel",),
            vmem_limit_bytes=VMEM_LIMIT_BYTES),
    )(x_pad, w_emb, w_conv, b_conv, mask_bias, w_out, b_out)

    return out[:b, :NUM_CLASSES]


def textcnn_reference(X, W_embed, conv_ws, conv_bs, Weight, Bias):
    """Pure-JAX replica of the PyTorch forward for correctness checking."""
    emb = W_embed[X].astype(jnp.float32)                               # [B, S, E]
    pooled_outputs = []
    for i, fs in enumerate(FILTER_SIZES):
        w, b = conv_ws[i], conv_bs[i]
        n_pos = SEQUENCE_LENGTH - fs + 1
        scores = []
        for p in range(n_pos):
            window = emb[:, p:p + fs, :]
            s = jnp.einsum('bse,fse->bf', window, w) + b[None, :]
            scores.append(s)
        h = jnp.maximum(jnp.stack(scores, axis=-1), 0.0)               # [B, NF, n_pos]
        pooled_outputs.append(jnp.max(h, axis=-1))                     # [B, NF]
    h_pool_flat = jnp.concatenate(pooled_outputs, axis=-1)
    return h_pool_flat @ Weight.T + Bias


if __name__ == "__main__":
    key = jax.random.PRNGKey(0)
    keys = jax.random.split(key, 4 + 2 * len(FILTER_SIZES))

    # Deterministic synthetic parameters (shapes follow the module __init__).
    W_embed = jax.random.normal(keys[0], (VOCAB_SIZE, EMBEDDING_SIZE),
                                jnp.float32) * 0.5
    Weight = jax.random.normal(keys[1], (NUM_CLASSES, NUM_FILTERS_TOTAL),
                               jnp.float32) * 0.5
    Bias = jnp.ones((NUM_CLASSES,), jnp.float32)                       # nn.Parameter(torch.ones)
    conv_ws = [jax.random.normal(keys[2 + i],
                                 (NUM_FILTERS, fs, EMBEDDING_SIZE),
                                 jnp.float32) * 0.5
               for i, fs in enumerate(FILTER_SIZES)]
    conv_bs = [jax.random.normal(keys[2 + len(FILTER_SIZES) + i],
                                 (NUM_FILTERS,), jnp.float32) * 0.1
               for i in range(len(FILTER_SIZES))]

    # Deterministic input token ids: [B, S] int32.
    X = jax.random.randint(keys[-1], (BATCH, SEQUENCE_LENGTH), 0, VOCAB_SIZE,
                           dtype=jnp.int32)

    out = textcnn_forward(X, W_embed, conv_ws, conv_bs, Weight, Bias)
    out = jax.block_until_ready(out)

    ref = textcnn_reference(X, W_embed, conv_ws, conv_bs, Weight, Bias)
    assert out.shape == (BATCH, NUM_CLASSES)
    tol = 1e-4 if MATMUL_DTYPE == jnp.float32 else 2e-2
    assert jnp.allclose(out, ref, atol=tol, rtol=tol), (out, ref)

    print("KERNEL_OK")
</pallas_src>

<mosaic_0001>
module attributes {stable_mosaic.version = 11 : i64} {
  func.func @textcnn_kernel(%arg0: i32, %arg1: memref<8x11xi32, #tpu.memory_space<vmem>>, %arg2: memref<128x8xf32, #tpu.memory_space<vmem>>, %arg3: memref<4x8x128xf32, #tpu.memory_space<vmem>>, %arg4: memref<1x128xf32, #tpu.memory_space<vmem>>, %arg5: memref<8x128xf32, #tpu.memory_space<vmem>>, %arg6: memref<128x128xf32, #tpu.memory_space<vmem>>, %arg7: memref<1x128xf32, #tpu.memory_space<vmem>>, %arg8: memref<8x128xf32, #tpu.memory_space<vmem>>) attributes {dimension_semantics = [#tpu.dimension_semantics<parallel>], iteration_bounds = array<i64: 2>, scalar_prefetch = 0 : i64, scratch_operands = 0 : i64, tpu.core_type = #tpu.core_type<tc>, window_params = [{transform_indices = @transform_0, window_bounds = array<i64: 8, 11>}, {pipeline_mode = #tpu.pipeline_mode<synchronous>, transform_indices = @transform_1, window_bounds = array<i64: 128, 8>}, {pipeline_mode = #tpu.pipeline_mode<synchronous>, transform_indices = @transform_2, window_bounds = array<i64: 4, 8, 128>}, {pipeline_mode = #tpu.pipeline_mode<synchronous>, transform_indices = @transform_3, window_bounds = array<i64: 1, 128>}, {pipeline_mode = #tpu.pipeline_mode<synchronous>, transform_indices = @transform_4, window_bounds = array<i64: 8, 128>}, {pipeline_mode = #tpu.pipeline_mode<synchronous>, transform_indices = @transform_5, window_bounds = array<i64: 128, 128>}, {pipeline_mode = #tpu.pipeline_mode<synchronous>, transform_indices = @transform_6, window_bounds = array<i64: 1, 128>}, {transform_indices = @transform_7, window_bounds = array<i64: 8, 128>}]} {
    %c0 = arith.constant 0 : index
    %c0_0 = arith.constant 0 : index
    %0 = vector.load %arg1[%c0, %c0_0] : memref<8x11xi32, #tpu.memory_space<vmem>>, vector<8x11xi32>
    %1 = vector.shape_cast %0 : vector<8x11xi32> to vector<8x11x1xi32>
    %2 = tpu.iota {dimensions = array<i32: 2>} : vector<8x11x128xi32>
    %3 = vector.broadcast %1 : vector<8x11x1xi32> to vector<8x11x128xi32>
    %4 = arith.cmpi eq, %3, %2 : vector<8x11x128xi32>
    %5 = arith.extui %4 : vector<8x11x128xi1> to vector<8x11x128xi32>
    %6 = arith.sitofp %5 : vector<8x11x128xi32> to vector<8x11x128xf32>
    %c0_1 = arith.constant 0 : index
    %c0_2 = arith.constant 0 : index
    %7 = vector.load %arg2[%c0_1, %c0_2] : memref<128x8xf32, #tpu.memory_space<vmem>>, vector<128x8xf32>
    "tpu.trace_start"() <{level = 10 : i32, message = "bsv,ve->bse"}> : () -> ()
    %cst = arith.constant dense<0.000000e+00> : vector<8x11x8xf32>
    %8 = tpu.matmul %6, %7, %cst {dimension_numbers = #tpu.dot_dimension_numbers<[2], [0], [0, 1], [1], [0, 0, 0, 1, 1, 1], [], []>} : vector<8x11x128xf32>, vector<128x8xf32>, vector<8x11x8xf32> -> vector<8x11x8xf32>
    "tpu.trace_stop"() : () -> ()
    %9 = vector.extract_strided_slice %8 {offsets = [0, 0, 0], sizes = [8, 8, 8], strides = [1, 1, 1]} : vector<8x11x8xf32> to vector<8x8x8xf32>
    %c0_3 = arith.constant 0 : index
    %c0_4 = arith.constant 0 : index
    %c0_5 = arith.constant 0 : index
    %10 = vector.load %arg3[%c0_3, %c0_4, %c0_5] : memref<4x8x128xf32, #tpu.memory_space<vmem>>, vector<1x8x128xf32>
    %11 = vector.shape_cast %10 : vector<1x8x128xf32> to vector<8x128xf32>
    "tpu.trace_start"() <{level = 10 : i32, message = "bpe,ef->bpf"}> : () -> ()
    %cst_6 = arith.constant dense<0.000000e+00> : vector<8x8x128xf32>
    %12 = tpu.matmul %9, %11, %cst_6 {dimension_numbers = #tpu.dot_dimension_numbers<[2], [0], [0, 1], [1], [0, 0, 0, 1, 1, 1], [], []>} : vector<8x8x8xf32>, vector<8x128xf32>, vector<8x8x128xf32> -> vector<8x8x128xf32>
    "tpu.trace_stop"() : () -> ()
    %13 = vector.extract_strided_slice %8 {offsets = [0, 1, 0], sizes = [8, 8, 8], strides = [1, 1, 1]} : vector<8x11x8xf32> to vector<8x8x8xf32>
    %c1 = arith.constant 1 : index
    %c0_7 = arith.constant 0 : index
    %c0_8 = arith.constant 0 : index
    %14 = vector.load %arg3[%c1, %c0_7, %c0_8] : memref<4x8x128xf32, #tpu.memory_space<vmem>>, vector<1x8x128xf32>
    %15 = vector.shape_cast %14 : vector<1x8x128xf32> to vector<8x128xf32>
    "tpu.trace_start"() <{level = 10 : i32, message = "bpe,ef->bpf"}> : () -> ()
    %cst_9 = arith.constant dense<0.000000e+00> : vector<8x8x128xf32>
    %16 = tpu.matmul %13, %15, %cst_9 {dimension_numbers = #tpu.dot_dimension_numbers<[2], [0], [0, 1], [1], [0, 0, 0, 1, 1, 1], [], []>} : vector<8x8x8xf32>, vector<8x128xf32>, vector<8x8x128xf32> -> vector<8x8x128xf32>
    "tpu.trace_stop"() : () -> ()
    %17 = arith.addf %12, %16 : vector<8x8x128xf32>
    %18 = vector.extract_strided_slice %8 {offsets = [0, 2, 0], sizes = [8, 8, 8], strides = [1, 1, 1]} : vector<8x11x8xf32> to vector<8x8x8xf32>
    %c2 = arith.constant 2 : index
    %c0_10 = arith.constant 0 : index
    %c0_11 = arith.constant 0 : index
    %19 = vector.load %arg3[%c2, %c0_10, %c0_11] : memref<4x8x128xf32, #tpu.memory_space<vmem>>, vector<1x8x128xf32>
    %20 = vector.shape_cast %19 : vector<1x8x128xf32> to vector<8x128xf32>
    "tpu.trace_start"() <{level = 10 : i32, message = "bpe,ef->bpf"}> : () -> ()
    %cst_12 = arith.constant dense<0.000000e+00> : vector<8x8x128xf32>
    %21 = tpu.matmul %18, %20, %cst_12 {dimension_numbers = #tpu.dot_dimension_numbers<[2], [0], [0, 1], [1], [0, 0, 0, 1, 1, 1], [], []>} : vector<8x8x8xf32>, vector<8x128xf32>, vector<8x8x128xf32> -> vector<8x8x128xf32>
    "tpu.trace_stop"() : () -> ()
    %22 = arith.addf %17, %21 : vector<8x8x128xf32>
    %23 = vector.extract_strided_slice %8 {offsets = [0, 3, 0], sizes = [8, 8, 8], strides = [1, 1, 1]} : vector<8x11x8xf32> to vector<8x8x8xf32>
    %c3 = arith.constant 3 : index
    %c0_13 = arith.constant 0 : index
    %c0_14 = arith.constant 0 : index
    %24 = vector.load %arg3[%c3, %c0_13, %c0_14] : memref<4x8x128xf32, #tpu.memory_space<vmem>>, vector<1x8x128xf32>
    %25 = vector.shape_cast %24 : vector<1x8x128xf32> to vector<8x128xf32>
    "tpu.trace_start"() <{level = 10 : i32, message = "bpe,ef->bpf"}> : () -> ()
    %cst_15 = arith.constant dense<0.000000e+00> : vector<8x8x128xf32>
    %26 = tpu.matmul %23, %25, %cst_15 {dimension_numbers = #tpu.dot_dimension_numbers<[2], [0], [0, 1], [1], [0, 0, 0, 1, 1, 1], [], []>} : vector<8x8x8xf32>, vector<8x128xf32>, vector<8x8x128xf32> -> vector<8x8x128xf32>
    "tpu.trace_stop"() : () -> ()
    %27 = arith.addf %22, %26 : vector<8x8x128xf32>
    %c0_16 = arith.constant 0 : index
    %c0_17 = arith.constant 0 : index
    %28 = vector.load %arg4[%c0_16, %c0_17] : memref<1x128xf32, #tpu.memory_space<vmem>>, vector<1x128xf32>
    %29 = vector.shape_cast %28 : vector<1x128xf32> to vector<1x1x128xf32>
    %30 = vector.broadcast %29 : vector<1x1x128xf32> to vector<8x8x128xf32>
    %31 = arith.addf %27, %30 : vector<8x8x128xf32>
    %cst_18 = arith.constant 0.000000e+00 : f32
    %32 = vector.broadcast %cst_18 : f32 to vector<8x8x128xf32>
    %33 = arith.maximumf %31, %32 : vector<8x8x128xf32>
    %c0_19 = arith.constant 0 : index
    %c0_20 = arith.constant 0 : index
    %34 = vector.load %arg5[%c0_19, %c0_20] : memref<8x128xf32, #tpu.memory_space<vmem>>, vector<8x128xf32>
    %35 = vector.shape_cast %34 : vector<8x128xf32> to vector<1x8x128xf32>
    %36 = vector.broadcast %35 : vector<1x8x128xf32> to vector<8x8x128xf32>
    %37 = arith.addf %33, %36 : vector<8x8x128xf32>
    %cst_21 = arith.constant dense<0xFF800000> : vector<8x128xf32>
    %38 = vector.multi_reduction <maximumf>, %37, %cst_21 [1] : vector<8x8x128xf32> to vector<8x128xf32>
    %c0_22 = arith.constant 0 : index
    %c0_23 = arith.constant 0 : index
    %39 = vector.load %arg6[%c0_22, %c0_23] : memref<128x128xf32, #tpu.memory_space<vmem>>, vector<128x128xf32>
    %cst_24 = arith.constant dense<0.000000e+00> : vector<8x128xf32>
    %40 = tpu.matmul %38, %39, %cst_24 {dimension_numbers = #tpu.dot_dimension_numbers<[1], [0], [0], [1], [0, 0, 1, 1], [], []>} : vector<8x128xf32>, vector<128x128xf32>, vector<8x128xf32> -> vector<8x128xf32>
    %c0_25 = arith.constant 0 : index
    %c0_26 = arith.constant 0 : index
    %41 = vector.load %arg7[%c0_25, %c0_26] : memref<1x128xf32, #tpu.memory_space<vmem>>, vector<1x128xf32>
    %42 = vector.broadcast %41 : vector<1x128xf32> to vector<8x128xf32>
    %43 = arith.addf %40, %42 : vector<8x128xf32>
    %c0_27 = arith.constant 0 : index
    %c0_28 = arith.constant 0 : index
    %44 = vector.load %arg8[%c0_27, %c0_28] : memref<8x128xf32, #tpu.memory_space<vmem>>, vector<8x128xf32>
    tpu.vector_store %arg8[%c0_27, %c0_28], %43 {strides = array<i32>} : memref<8x128xf32, #tpu.memory_space<vmem>>, vector<8x128xf32>,
    return
  }
  func.func @transform_0(%arg0: i32) -> (i32, i32) {
    %c0_i32 = arith.constant 0 : i32
    %c0_i32_0 = arith.constant 0 : i32
    return %arg0, %c0_i32 : i32, i32
  }
  func.func @transform_1(%arg0: i32) -> (i32, i32) {
    %c0_i32 = arith.constant 0 : i32
    %c0_i32_0 = arith.constant 0 : i32
    %c0_i32_1 = arith.constant 0 : i32
    return %c0_i32, %c0_i32_0 : i32, i32
  }
  func.func @transform_2(%arg0: i32) -> (i32, i32, i32) {
    %c0_i32 = arith.constant 0 : i32
    %c0_i32_0 = arith.constant 0 : i32
    %c0_i32_1 = arith.constant 0 : i32
    %c0_i32_2 = arith.constant 0 : i32
    return %c0_i32, %c0_i32_0, %c0_i32_1 : i32, i32, i32
  }
  func.func @transform_3(%arg0: i32) -> (i32, i32) {
    %c0_i32 = arith.constant 0 : i32
    %c0_i32_0 = arith.constant 0 : i32
    %c0_i32_1 = arith.constant 0 : i32
    return %c0_i32, %c0_i32_0 : i32, i32
  }
  func.func @transform_4(%arg0: i32) -> (i32, i32) {
    %c0_i32 = arith.constant 0 : i32
    %c0_i32_0 = arith.constant 0 : i32
    %c0_i32_1 = arith.constant 0 : i32
    return %c0_i32, %c0_i32_0 : i32, i32
  }
  func.func @transform_5(%arg0: i32) -> (i32, i32) {
    %c0_i32 = arith.constant 0 : i32
    %c0_i32_0 = arith.constant 0 : i32
    %c0_i32_1 = arith.constant 0 : i32
    return %c0_i32, %c0_i32_0 : i32, i32
  }
  func.func @transform_6(%arg0: i32) -> (i32, i32) {
    %c0_i32 = arith.constant 0 : i32
    %c0_i32_0 = arith.constant 0 : i32
    %c0_i32_1 = arith.constant 0 : i32
    return %c0_i32, %c0_i32_0 : i32, i32
  }
  func.func @transform_7(%arg0: i32) -> (i32, i32) {
    %c0_i32 = arith.constant 0 : i32
    %c0_i32_0 = arith.constant 0 : i32
    return %arg0, %c0_i32 : i32, i32
  }
}

</mosaic_0001>

<bundles_post_ra>
// kernel: tpu_custom_call.1
= control target key start
LH: loop header
LB: loop body
LE: loop exit
PB: predicated region body
PF: predicated region fallthrough
CT: control target
= control target key end

     0   :  { %12 = vsyncpa [#allocation3], 0  ;;  %s6260_s0 = inlined_call_operand.vmem [shape: s32[16,11], index: 0, kind: input, shape index: {}]   ;;  %s6261_s1 = inlined_call_operand.vmem [shape: f32[128,8], index: 1, kind: input, shape index: {}]   ;;  %s6262_s2 = inlined_call_operand.hbm [shape: f32[4,8,128], index: 2, kind: input, shape index: {}]   ;;  %s6263_s3 = inlined_call_operand.vmem [shape: f32[1,128], index: 3, kind: input, shape index: {}]   ;;  %s6264_s4 = inlined_call_operand.vmem [shape: f32[8,128], index: 4, kind: input, shape index: {}]   ;;  %s6265_s5 = inlined_call_operand.vmem [shape: f32[128,128], index: 5, kind: input, shape index: {}]   ;;  %s6266_s6 = inlined_call_operand.vmem [shape: f32[1,128], index: 6, kind: input, shape index: {}]   ;;  %s6267_s7 = inlined_call_operand.hbm [shape: f32[16,128], index: 7, kind: output, shape index: {}]  }
   0x1   :  { %13 = vsyncpa [#allocation4], 0 }
   0x2   :  { %15 = vsyncpa [#allocation4 + $0x1], 0  ;;  %s4828_s24 = smov 0   ;;  %s4830_s25 = smov 0  }
   0x3   :  { %s4832_s26 = smov 0   ;;  %s4834_s27 = smov 0  }
   0x4 LB: > { %s4849_s28 = sadd.s32 4294967295, %s4778_s27   ;;  %s4230_s29 = sadd.s32 4294967294, %s4778_s27   ;;  %s4778_s27 = sphi %s4834_s27, %s6381_s27   ;;  %s4774_s26 = sphi %s4832_s26, %s6380_s26   ;;  %s4770_s25 = sphi %s4830_s25, %s6379_s25   ;;  %s4766_s24 = sphi %s4828_s24, %s6378_s24  }
   0x5   : > { %s4853_s30 = sadd.s32 1, %s4778_s27   ;;  %s180_s8 = sadd.s32 1, %s4774_s26 }
   0x6   : > { %s177_s9 = ssub.s32 %s4778_s27, %s4853_s30  ;;  %p190_p0 = scmp.ne.s32.totalorder %s4774_s26, %s4770_s25 }
   0x7   : > { %p178_p1 = scmp.eq.s32.totalorder %s177_s9, 0  ;;  %p191_p2 = scmp.eq.s32.totalorder %s4849_s28, 1 }
   0x8   : > { %p196_p3 = scmp.ne.s32.totalorder %s4770_s25, %s4766_s24  ;;  %p197_p4 = scmp.eq.s32.totalorder %s4230_s29, 1 }
   0x9   : > { %s4864_s10 = scalar_select %p178_p1, %s4774_s26, %s180_s8  }
   0xa   : > { %p4866_p5 = por %p191_p2, %p190_p0  ;;  %p4870_p6 = por %p197_p4, %p196_p3 }
   0xb   : > { %p4231_p7 = scmp.ge.s32.totalorder %s4778_s27, 1  ;;  %p204_p8 = scmp.lt.s32.totalorder %s4778_s27, 3 }
   0xc   : > { %s6290_s11 = scalar_select %p4866_p5, 1, 0 }
   0xd   : > { %s6291_s12 = scalar_select %p4870_p6, 1, 0 }
   0xe   : > { %p6268_p9 = scmp.eq.s32.totalorder %s4849_s28, 0  ;;  %p4877_p10 = pnand %p4231_p7, %p204_p8 }
   0xf   : > { %s4780_s14 = smov [#allocation2]   ;;  %s4684_s19 = scalar_lea.hbm %s6262_s2, 512 }
  0x10   : > { %s6292_s13 = scalar_select %p4877_p10, 1, 0 }
  0x11   : > { %s219_s15 = sshll.u32 %s4780_s14, 4  ;;  %p4634_p11 = pneg %p4877_p10  ;;  %s220_s15 = int_to_ptr.vmem [resolvable:$true] %s219_s15 }
  0x12   : > { %p4685_p13 = scmp.ne.s32.totalorder %s6262_s2, %s4684_s19  ;;  %p4691_p3 = scmp.lt.u32.totalorder %s4684_s19, %s6262_s2 }
  0x13   : > { %p4885_p12 = pnand %p6268_p9, %p4634_p11 }
  0x15   : > { %p4686_p0 = pneg %p4885_p12 }
  0x17   : > { %p4687_p1 = pnand %p4686_p0, %p4685_p13 }
  0x19   : > { %p4688_p2 = pneg %p4687_p1 }
  0x1b   : > { %p4693_p4 = pnand %p4691_p3, %p4688_p2 }
  0x1d   : > { %4696 = shalt.err (!%p4693_p4)
}
  0x1e   : > { %s4697_s29 = scalar_lea.vmem %s220_s15, 512  ;;  %p4705_p9 = scmp.lt.s32.totalorder %s220_s15, %s220_s15 }
  0x1f   : > { %p4698_p7 = scmp.ne.s32.totalorder %s220_s15, %s4697_s29  ;;  %p4706_p6 = scmp.lt.s32.totalorder %s4697_s29, %s4697_s29 }
  0x21   : > { %p4700_p8 = pnand %p4698_p7, %p4686_p0  ;;  %p4707_p5 = por %p4706_p6, %p4705_p9 }
  0x23   : > { %p4701_p11 = pneg %p4700_p8 }
  0x25   : > { %p4708_p10 = pnand %p4707_p5, %p4701_p11 }
  0x27   : > { %4711 = shalt.err (!%p4708_p10)
}
  0x28   : > { %s4781_s8 = smov 128   ;;  %s4782_s9 = smov 8  }
  0x29   : > { %4637 = dma.hbm_to_vmem [thread:$0]  (!%p4885_p12), %s6262_s2, 512, %s220_s15, [#allocation3], %s4781_s8, %s4781_s8, %s4782_s9  }
  0x2a   : > { %p6294_p13 = scmp.ne.s32.totalorder %s6292_s13, 0 }
  0x2c   : > { %254 = sbr.rel (%p6294_p13) target bundleno = 1028 (0x404), region = 48 }
  0x33   : > { %p6295_p1 = scmp.eq.s32.totalorder %s4849_s28, 0 }
  0x35   : > { %4757 = dma.done.wait (%p6295_p1), [#allocation3], 512   ;;  %p6296_p0 = pmov %p6295_p1 }
  0x36   : > { %p285_p5 = scmp.lt.s32.totalorder %s4849_s28, 1  ;;  %v290_v0 = vlaneseq  ;;  %v6271_v1 = vmov 0.0|0.0   ;;  %v428_v6 = vld [vmem:[%s6261_s1] sm:$0xff]  ;;  %v429_v7 = vld [vmem:[%s6261_s1 + $0x8] sm:$0xff]  ;;  %v430_v9 = vld [vmem:[%s6261_s1 + $0x10] sm:$0xff]  ;;  %vm4784_vm0 = vmmov 0  }
  0x37   : > { %4759 = vsyncadd (%p6296_p0), [#allocation3], 4294966784  ;;  %4556 = vmatprep.subr.bf16.mxu0 %v6271_v1  ;;  %v431_v10 = vld [vmem:[%s6261_s1 + $0x18] sm:$0xff]  ;;  %v4557_v13 = vpack.c.bf16 %v429_v7, %v428_v6  ;;  %v432_v15 = vld [vmem:[%s6261_s1 + $0x20] sm:$0xff]  ;;  %v4785_v32 = vmov 0.0   ;;  %s282_s18 = sand.u32 1, %s4770_s25  }
  0x38   : > { %s286_s16 = scalar_select %p285_p5, %s4849_s28, 1  ;;  %v4915_v2 = vshrl.u32 %v290_v0, 7  ;;  %v4560_v14 = vpack.c.bf16 %v431_v10, %v430_v9  ;;  %v433_v16 = vld [vmem:[%s6261_s1 + $0x28] sm:$0xff]  ;;  %v434_v20 = vld [vmem:[%s6261_s1 + $0x30] sm:$0xff]  ;;  %v435_v21 = vld [vmem:[%s6261_s1 + $0x38] sm:$0xff]  ;;  %4432 = vmatprep.mubr.msk.f32.mxu0 %vm4784_vm0, %v4785_v32  ;;  %v4997_v48 = vand.u32 127, %v290_v0 }
  0x39   : > { %4558 = vmatpush3.bf16.msra.mxu0 %v4557_v13  ;;  %v4563_v19 = vpack.c.bf16 %v433_v16, %v432_v15  ;;  %v4566_v24 = vpack.c.bf16 %v435_v21, %v434_v20  ;;  %v436_v25 = vld [vmem:[%s6261_s1 + $0x40] sm:$0xff]  ;;  %v437_v26 = vld [vmem:[%s6261_s1 + $0x48] sm:$0xff]  ;;  %v438_v30 = vld [vmem:[%s6261_s1 + $0x50] sm:$0xff]  ;;  %v4786_v45 = vmov 1966171168   ;;  %s4317_s22 = sshll.u32 %s4849_s28, 7 }
  0x3a   : > { %s4237_s15 = sshll.u32 %s286_s16, 3  ;;  %v292_v3 = vsub.s32 0, %v4915_v2  ;;  %v303_v4 = vsub.s32 1, %v4915_v2  ;;  %v314_v12 = vsub.s32 2, %v4915_v2  ;;  %4559 = vmatprep.subr.bf16.mxu0 %v6271_v1  ;;  %v325_v18 = vsub.s32 3, %v4915_v2  ;;  %v439_v31 = vld [vmem:[%s6261_s1 + $0x58] sm:$0xff]  ;;  %s6218_s14 = scalar_lea.hbm %s6267_s7, %s4317_s22 }
  0x3b   : > { %s288_s19 = scalar_lea.vmem %s6260_s0, %s4237_s15  ;;  %v336_v23 = vsub.s32 4, %v4915_v2  ;;  %v347_v28 = vsub.s32 5, %v4915_v2  ;;  %v4569_v29 = vpack.c.bf16 %v437_v26, %v436_v25  ;;  %v358_v34 = vsub.s32 6, %v4915_v2  ;;  %v440_v36 = vld [vmem:[%s6261_s1 + $0x60] sm:$0xff]  ;;  %v441_v37 = vld [vmem:[%s6261_s1 + $0x68] sm:$0xff]  ;;  %v442_v41 = vld [vmem:[%s6261_s1 + $0x70] sm:$0xff] }
  0x3c   : > { %v4922_v5 = vld [vmem:[%s288_s19] sm:$0xff]  ;;  %v4572_v35 = vpack.c.bf16 %v439_v31, %v438_v30  ;;  %v369_v39 = vsub.s32 7, %v4915_v2  ;;  %v4575_v40 = vpack.c.bf16 %v441_v37, %v440_v36  ;;  %v443_v42 = vld [vmem:[%s6261_s1 + $0x78] sm:$0xff]  ;;  %v462_v46 = vunpack.c.l.s4 %v4786_v45  ;;  %s4236_s19 = sshll.u32 %s282_s18, 3  ;;  %s4146_s17 = scalar_lea.sflag [#allocation4], %s282_s18 }
  0x3d   : > { %v293_v8 = vrot.slane %v4922_v5, %v292_v3  ;;  %v304_v11 = vrot.slane %v4922_v5, %v303_v4  ;;  %v315_v17 = vrot.slane %v4922_v5, %v314_v12  ;;  %4561 = vmatpush3.bf16.msra.mxu0 %v4560_v14  ;;  %v326_v22 = vrot.slane %v4922_v5, %v325_v18  ;;  %s284_s23 = scalar_lea.vmem [#allocation5], %s4236_s19  ;;  %p6376_p9 = scmp.ne.s32.totalorder %s6290_s11, 0 }
  0x3e   : > { %4562 = vmatprep.subr.bf16.mxu0 %v6271_v1  ;;  %v337_v27 = vrot.slane %v4922_v5, %v336_v23  ;;  %v348_v33 = vrot.slane %v4922_v5, %v347_v28  ;;  %v359_v38 = vrot.slane %v4922_v5, %v358_v34  ;;  %v370_v43 = vrot.slane %v4922_v5, %v369_v39  ;;  %s4159_s29 = sshll.u32 %s284_s23, 4  ;;  %s4787_s28 = smov [#allocation5]   ;;  %s6220_s29 = int_to_ptr.vmem [resolvable:$true] %s4159_s29 }
  0x3f   : > { %295 = vbcast.lane.b32.xlu0 %v293_v8, 256  ;;  %299 = vbcast.lane.b32.xlu1 %v293_v8, 264  ;;  %v4578_v44 = vpack.c.bf16 %v443_v42, %v442_v41  ;;  %v463_v47 = vunpack.c.0.s8 %v462_v46  ;;  %s4712_s16 = scalar_lea.vmem %s6220_s29, 128  ;;  %s4716_s15 = sshll.u32 %s4787_s28, 4  ;;  %s4717_s15 = int_to_ptr.vmem [resolvable:$false] %s4716_s15 }
  0x40   : > { %p4713_p6 = scmp.ne.s32.totalorder %s6220_s29, %s4712_s16  ;;  %s4718_s13 = scalar_lea.vmem %s4717_s15, 256 }
  0x41   : > { %4564 = vmatpush3.bf16.msra.mxu0 %v4563_v19  ;;  %v5000_v49 = vsub.s32 %v463_v47, %v4915_v2  ;;  %p4719_p2 = scmp.lt.s32.totalorder %s6220_s29, %s4717_s15  ;;  %p4720_p3 = scmp.lt.s32.totalorder %s4718_s13, %s4712_s16 }
  0x42   : > { %4565 = vmatprep.subr.bf16.mxu0 %v6271_v1  ;;  %p4714_p10 = pnand %p4713_p6, %p6376_p9 }
  0x43   : > { %306 = vbcast.lane.b32.xlu0 %v304_v11, 256  ;;  %310 = vbcast.lane.b32.xlu1 %v304_v11, 264  ;;  %p4721_p4 = por %p4720_p3, %p4719_p2 }
  0x44   : > { %p4715_p12 = pneg %p4714_p10 }
  0x45   : > { %4567 = vmatpush3.bf16.msra.mxu0 %v4566_v24 }
  0x46   : > { %4568 = vmatprep.subr.bf16.mxu0 %v6271_v1  ;;  %p4722_p7 = pnand %p4721_p4, %p4715_p12 }
  0x47   : > { %317 = vbcast.lane.b32.xlu0 %v315_v17, 256  ;;  %321 = vbcast.lane.b32.xlu1 %v315_v17, 264 }
  0x49   : > { %4570 = vmatpush3.bf16.msra.mxu0 %v4569_v29 }
  0x4a   : > { %4571 = vmatprep.subr.bf16.mxu0 %v6271_v1 }
  0x4b   : > { %328 = vbcast.lane.b32.xlu0 %v326_v22, 256  ;;  %332 = vbcast.lane.b32.xlu1 %v326_v22, 264 }
  0x4d   : > { %4573 = vmatpush3.bf16.msra.mxu0 %v4572_v35 }
  0x4e   : > { %4574 = vmatprep.subr.bf16.mxu0 %v6271_v1 }
  0x4f   : > { %339 = vbcast.lane.b32.xlu0 %v337_v27, 256  ;;  %343 = vbcast.lane.b32.xlu1 %v337_v27, 264 }
  0x51   : > { %4576 = vmatpush3.bf16.msra.mxu0 %v4575_v40 }
  0x52   : > { %4577 = vmatprep.subr.bf16.mxu0 %v6271_v1 }
  0x53   : > { %350 = vbcast.lane.b32.xlu0 %v348_v33, 256  ;;  %354 = vbcast.lane.b32.xlu1 %v348_v33, 264 }
  0x55   : > { %4579 = vmatpush3.bf16.msra.mxu0 %v4578_v44 }
  0x56   : > { %4580 = vmatprep.subr.bf16.mxu0 %v6271_v1 }
  0x57   : > { %361 = vbcast.lane.b32.xlu0 %v359_v38, 256  ;;  %365 = vbcast.lane.b32.xlu1 %v359_v38, 264 }
  0x5b   : > { %372 = vbcast.lane.b32.xlu0 %v370_v43, 256  ;;  %376 = vbcast.lane.b32.xlu1 %v370_v43, 264 }
  0xb1   : > { %v296_v50 = vpop.permute.xlu0 %295  ;;  %v300_v51 = vpop.permute.xlu1 %299 }
  0xb2   : > { %vm380_vm1 = vcmp.eq.s32.totalorder %v296_v50, %v4997_v48  ;;  %vm381_vm2 = vcmp.eq.s32.totalorder %v300_v51, %v4997_v48 }
  0xb3   : > { %v4238_v52 = vsel %vm380_vm1, 1.0, %v4785_v32  ;;  %v4239_v53 = vsel %vm381_vm2, 1.0, %v4785_v32  ;;  %vm4059_vm2 = vcmask 1041409  }
  0xb4   : > { %v460_v54 = vcombine.high %v4238_v52, %v4238_v52  ;;  %v467_v55 = vrot.slane %v4238_v52, %v5000_v49  ;;  %v515_v56 = vrot.slane %v4239_v53, %v5000_v49 }
  0xb5   : > { %v307_v57 = vpop.permute.xlu0 %306  ;;  %v311_v61 = vpop.permute.xlu1 %310 }
  0xb6   : > { %v474_v58 = vrot.slane %v460_v54, %v5000_v49  ;;  %v475_v59 = vcombine.high %v467_v55, %v467_v55  ;;  %v516_v60 = vcombine.high %v515_v56, %v515_v56  ;;  %vm382_vm3 = vcmp.eq.s32.totalorder %v307_v57, %v4997_v48 }
  0xb7   : > { %vm383_vm4 = vcmp.eq.s32.totalorder %v311_v61, %v4997_v48  ;;  %v4240_v0 = vsel %vm382_vm3, 1.0, %v4785_v32  ;;  %v483_v4 = vrot.slane %v467_v55, %v5000_v49  ;;  %v523_v6 = vrot.slane %v515_v56, %v5000_v49 }
  0xb8   : > { %v476_v62 = vcombine.high %v474_v58, %v474_v58  ;;  %v497_v63 = vrot.slane %v475_v59, %v5000_v49  ;;  %v4241_v2 = vsel %vm383_vm4, 1.0, %v4785_v32  ;;  %v530_v7 = vrot.slane %v516_v60, %v5000_v49 }
  0xb9   : > { %v318_v3 = vpop.permute.xlu0 %317  ;;  %v532_v8 = vcombine.high %v4240_v0, %v4240_v0  ;;  %v539_v9 = vrot.slane %v4240_v0, %v5000_v49  ;;  %v587_v10 = vrot.slane %v4241_v2, %v5000_v49  ;;  %v5024_v11 = vrot.slane %v474_v58, %v5000_v49  ;;  %v322_v17 = vpop.permute.xlu1 %321 }
  0xba   : > { %v5016_v5 = vrot.slane %v476_v62, %v5000_v49  ;;  %vm384_vm5 = vcmp.eq.s32.totalorder %v318_v3, %v4997_v48  ;;  %v1036_v12 = vcombine.low %v483_v4, %v497_v63  ;;  %v4254_v13 = vcombine.high %v483_v4, %v497_v63 }
  0xbb   : > { %v546_v14 = vrot.slane %v532_v8, %v5000_v49  ;;  %v547_v15 = vcombine.high %v539_v9, %v539_v9  ;;  %v555_v16 = vrot.slane %v539_v9, %v5000_v49  ;;  %v531_v19 = vcombine.high %v523_v6, %v523_v6 }
  0xbc   : > { %v1038_v18 = vcombine.low %v5024_v11, %v5016_v5  ;;  %v1085_v20 = vcombine.low %v523_v6, %v530_v7  ;;  %v4242_v21 = vsel %vm384_vm5, 1.0, %v4785_v32  ;;  %v588_v24 = vcombine.high %v587_v10, %v587_v10 }
  0xbd   : > { %v548_v22 = vcombine.high %v546_v14, %v546_v14  ;;  %v562_v23 = vrot.slane %v546_v14, %v5000_v49  ;;  %v595_v25 = vrot.slane %v587_v10, %v5000_v49  ;;  %v4255_v26 = vcombine.high %v5024_v11, %v5016_v5  ;;  %v329_v38 = vpop.permute.xlu0 %328  ;;  %v333_v47 = vpop.permute.xlu1 %332 }
  0xbe   : > { %v569_v27 = vrot.slane %v547_v15, %v5000_v49  ;;  %v604_v28 = vcombine.high %v4242_v21, %v4242_v21  ;;  %vm385_vm6 = vcmp.eq.s32.totalorder %v322_v17, %v4997_v48  ;;  %v5038_v29 = vrot.slane %v1036_v12, %v5000_v49 }
  0xbf   : > { %v5041_v30 = vrot.slane %v4254_v13, %v5000_v49  ;;  %v576_v31 = vrot.slane %v548_v22, %v5000_v49  ;;  %v577_v33 = vcombine.high %v555_v16, %v555_v16  ;;  %v5045_v34 = vrot.slane %v1085_v20, %v5000_v49 }
  0xc0   : > { %v5047_v35 = vcombine.low %v531_v19, %v555_v16  ;;  %v611_v36 = vrot.slane %v4242_v21, %v5000_v49  ;;  %v618_v37 = vrot.slane %v604_v28, %v5000_v49  ;;  %v578_v39 = vcombine.high %v562_v23, %v562_v23 }
  0xc1   : > { %v602_v40 = vrot.slane %v588_v24, %v5000_v49  ;;  %v603_v41 = vcombine.high %v595_v25, %v595_v25  ;;  %v4243_v42 = vsel %vm385_vm6, 1.0, %v4785_v32  ;;  %v579_v43 = vcombine.high %v569_v27, %v569_v27  ;;  %v340_v6 = vpop.permute.xlu0 %339 }
  0xc2   : > { %v580_v44 = vcombine.high %v576_v31, %v576_v31  ;;  %v619_v45 = vcombine.high %v611_v36, %v611_v36  ;;  %v620_v46 = vcombine.high %v618_v37, %v618_v37  ;;  %v5053_v50 = vcombine.low %v569_v27, %v577_v33 }
  0xc3   : > { %v659_v51 = vrot.slane %v4243_v42, %v5000_v49  ;;  %vm386_vm7 = vcmp.eq.s32.totalorder %v329_v38, %v4997_v48  ;;  %vm387_vm8 = vcmp.eq.s32.totalorder %v333_v47, %v4997_v48  ;;  %v1102_v52 = vrot.slane %v5047_v35, %v5000_v49  ;;  %v344_v42 = vpop.permute.xlu1 %343 }
  0xc4   : > { %v627_v53 = vrot.slane %v611_v36, %v5000_v49  ;;  %v641_v54 = vrot.slane %v619_v45, %v5000_v49  ;;  %v4244_v55 = vsel %vm386_vm7, 1.0, %v4785_v32  ;;  %v5063_v56 = vcombine.low %v602_v40, %v603_v41 }
  0xc5   : > { %v660_v57 = vcombine.high %v659_v51, %v659_v51  ;;  %v676_v58 = vcombine.high %v4244_v55, %v4244_v55  ;;  %v4245_v59 = vsel %vm387_vm8, 1.0, %v4785_v32  ;;  %v5066_v60 = vcombine.low %v579_v43, %v562_v23 }
  0xc6   : > { %v5068_v61 = vcombine.low %v580_v44, %v595_v25  ;;  %v5071_v62 = vrot.slane %v618_v37, %v5000_v49  ;;  %v5074_v63 = vrot.slane %v620_v46, %v5000_v49  ;;  %v667_v0 = vrot.slane %v659_v51, %v5000_v49 }
  0xc7   : > { %v674_v2 = vrot.slane %v660_v57, %v5000_v49  ;;  %v683_v3 = vrot.slane %v4244_v55, %v5000_v49  ;;  %v690_v4 = vrot.slane %v676_v58, %v5000_v49  ;;  %v1137_v7 = vcombine.low %v627_v53, %v641_v54  ;;  %v351_v55 = vpop.permute.xlu0 %350 }
  0xc8   : > { %v4256_v8 = vcombine.high %v627_v53, %v641_v54  ;;  %v731_v9 = vrot.slane %v4245_v59, %v5000_v49  ;;  %vm388_vm9 = vcmp.eq.s32.totalorder %v340_v6, %v4997_v48  ;;  %v675_v10 = vcombine.high %v667_v0, %v667_v0 }
  0xc9   : > { %v691_v12 = vcombine.high %v683_v3, %v683_v3  ;;  %v692_v13 = vcombine.high %v690_v4, %v690_v4  ;;  %v699_v14 = vrot.slane %v683_v3, %v5000_v49  ;;  %v706_v15 = vrot.slane %v690_v4, %v5000_v49 }
  0xca   : > { %v732_v16 = vcombine.high %v731_v9, %v731_v9  ;;  %v739_v17 = vrot.slane %v731_v9, %v5000_v49  ;;  %v4246_v19 = vsel %vm388_vm9, 1.0, %v4785_v32  ;;  %v5086_v20 = vcombine.low %v576_v31, %v578_v39 }
  0xcb   : > { %v1151_v21 = vrot.slane %v5068_v61, %v5000_v49  ;;  %v1186_v22 = vcombine.low %v667_v0, %v674_v2  ;;  %v713_v23 = vrot.slane %v691_v12, %v5000_v49  ;;  %v5092_v24 = vrot.slane %v1137_v7, %v5000_v49  ;;  %v355_v12 = vpop.permute.xlu1 %354 }
  0xcc   : > { %v1184_v25 = vcombine.low %v5071_v62, %v5074_v63  ;;  %v4257_v27 = vcombine.high %v5071_v62, %v5074_v63  ;;  %v721_v28 = vcombine.high %v699_v14, %v699_v14  ;;  %v720_v33 = vrot.slane %v692_v13, %v5000_v49 }
  0xcd   : > { %v722_v31 = vcombine.high %v706_v15, %v706_v15  ;;  %v5099_v36 = vcombine.low %v675_v10, %v699_v14  ;;  %v748_v37 = vcombine.high %v4246_v19, %v4246_v19  ;;  %v5102_v38 = vrot.slane %v4256_v8, %v5000_v49 }
  0xce   : > { %v746_v39 = vrot.slane %v732_v16, %v5000_v49  ;;  %v747_v40 = vcombine.high %v739_v17, %v739_v17  ;;  %v755_v41 = vrot.slane %v4246_v19, %v5000_v49  ;;  %v5107_v43 = vrot.slane %v1186_v22, %v5000_v49 }
  0xcf   : > { %v723_v44 = vcombine.high %v713_v23, %v713_v23  ;;  %v762_v45 = vrot.slane %v748_v37, %v5000_v49  ;;  %v1060_v46 = vrot.slane %v1038_v18, %v5000_v49  ;;  %v5114_v47 = vcombine.low %v713_v23, %v721_v28  ;;  %v362_v28 = vpop.permute.xlu0 %361 }
  0xd0   : > { %v763_v51 = vcombine.high %v755_v41, %v755_v41  ;;  %v1067_v53 = vrot.slane %v4255_v26, %v5000_v49  ;;  %v1068_v54 = vcombine.low %v5038_v29, %v5041_v30  ;;  %v5122_v57 = vcombine.low %v720_v33, %v722_v31 }
  0xd1   : > { %v1242_v58 = vrot.slane %v5099_v36, %v5000_v49  ;;  %v724_v59 = vcombine.high %v720_v33, %v720_v33  ;;  %vm389_vm10 = vcmp.eq.s32.totalorder %v344_v42, %v4997_v48  ;;  %v5127_v18 = vcombine.low %v746_v39, %v747_v40 }
  0xd2   : > { %v764_v0 = vcombine.high %v762_v45, %v762_v45  ;;  %v1069_v2 = vcombine.low %v1060_v46, %v1067_v53  ;;  %v4247_v3 = vsel %vm389_vm10, 1.0, %v4785_v32  ;;  %v771_v5 = vrot.slane %v755_v41, %v5000_v49 }
  0xd3   : > { %v785_v11 = vrot.slane %v763_v51, %v5000_v49  ;;  %v803_v26 = vrot.slane %v4247_v3, %v5000_v49  ;;  %vm390_vm11 = vcmp.eq.s32.totalorder %v351_v55, %v4997_v48  ;;  %v5134_v29 = vcombine.low %v723_v44, %v706_v15  ;;  %v366_v3 = vpop.permute.xlu1 %365 }
  0xd4   : > { %v1076_v30 = vrot.slane %v1068_v54, %v5000_v49  ;;  %v1083_v4 = vrot.slane %v1069_v2, %v5000_v49  ;;  %v4248_v6 = vsel %vm390_vm11, 1.0, %v4785_v32  ;;  %v5139_v7 = vcombine.low %v724_v59, %v739_v17 }
  0xd5   : > { %v5142_v8 = vrot.slane %v762_v45, %v5000_v49  ;;  %v804_v9 = vcombine.high %v803_v26, %v803_v26  ;;  %v811_v10 = vrot.slane %v803_v26, %v5000_v49  ;;  %v5146_v13 = vrot.slane %v764_v0, %v5000_v49 }
  0xd6   : > { %v1084_v14 = vcombine.low %v1076_v30, %v1083_v4  ;;  %v820_v15 = vcombine.high %v4248_v6, %v4248_v6  ;;  %v1109_v16 = vrot.slane %v5053_v50, %v5000_v49  ;;  %v1283_v19 = vcombine.low %v771_v5, %v785_v11 }
  0xd7   : > { %v818_v22 = vrot.slane %v804_v9, %v5000_v49  ;;  %v827_v17 = vrot.slane %v4248_v6, %v5000_v49  ;;  %v1116_v23 = vrot.slane %v5066_v60, %v5000_v49  ;;  %v4258_v33 = vcombine.high %v771_v5, %v785_v11 }
  0xd8   : > { %4433 = vmatmul.mubr.f32.vlgmr.msra.gmra.mrb[0].mxu0 %v1084_v14  ;;  %v834_v31 = vrot.slane %v820_v15, %v5000_v49  ;;  %v1117_v37 = vcombine.low %v5045_v34, %v1102_v52  ;;  %vm391_vm12 = vcmp.eq.s32.totalorder %v355_v12, %v4997_v48  ;;  %v819_v50 = vcombine.high %v811_v10, %v811_v10 }
  0xd9   : > { %v835_v39 = vcombine.high %v827_v17, %v827_v17  ;;  %v843_v40 = vrot.slane %v827_v17, %v5000_v49  ;;  %4435 = vmatprep.mubr.msk.f32.mxu0 %vm4784_vm0, %v4785_v32  ;;  %v1118_v60 = vcombine.low %v1109_v16, %v1116_v23  ;;  %v1332_v41 = vcombine.low %v811_v10, %v818_v22 }
  0xda   : > { %v836_v42 = vcombine.high %v834_v31, %v834_v31  ;;  %v4249_v44 = vsel %vm391_vm12, 1.0, %v4785_v32  ;;  %vm392_vm13 = vcmp.eq.s32.totalorder %v362_v28, %v4997_v48  ;;  %v1291_v35 = vrot.slane %v5139_v7, %v5000_v49 }
  0xdb   : > { %v1330_v34 = vcombine.low %v5142_v8, %v5146_v13  ;;  %v4259_v52 = vcombine.high %v5142_v8, %v5146_v13  ;;  %v850_v45 = vrot.slane %v834_v31, %v5000_v49  ;;  %v1125_v51 = vrot.slane %v1117_v37, %v5000_v49 }
  0xdc   : > { %v864_v46 = vrot.slane %v836_v42, %v5000_v49  ;;  %v1132_v53 = vrot.slane %v1118_v60, %v5000_v49  ;;  %v875_v54 = vrot.slane %v4249_v44, %v5000_v49  ;;  %v5177_v55 = vrot.slane %v1283_v19, %v5000_v49 }
  0xdd   : > { %v857_v59 = vrot.slane %v835_v39, %v5000_v49  ;;  %v5180_v0 = vcombine.low %v819_v50, %v843_v40  ;;  %v4250_v2 = vsel %vm392_vm13, 1.0, %v4785_v32  ;;  %v5184_v5 = vrot.slane %v4258_v33, %v5000_v49  ;;  %v373_v33 = vpop.permute.xlu0 %372 }
  0xde   : > { %v5187_v11 = vrot.slane %v1332_v41, %v5000_v49  ;;  %v865_v26 = vcombine.high %v843_v40, %v843_v40  ;;  %v1133_v30 = vcombine.low %v1125_v51, %v1132_v53  ;;  %v868_v4 = vcombine.high %v864_v46, %v864_v46 }
  0xdf   : > { %v883_v6 = vrot.slane %v875_v54, %v5000_v49  ;;  %v892_v9 = vcombine.high %v4250_v2, %v4250_v2  ;;  %v899_v10 = vrot.slane %v4250_v2, %v5000_v49  ;;  %v866_v12 = vcombine.high %v850_v45, %v850_v45 }
  0xe0   : > { %4436 = vmatmul.mubr.f32.gmra.mrb[2].mxu0 %v1133_v30  ;;  %v1144_v14 = vrot.slane %v5086_v20, %v5000_v49  ;;  %v1158_v15 = vrot.slane %v5063_v56, %v5000_v49  ;;  %vm393_vm14 = vcmp.eq.s32.totalorder %v366_v3, %v4997_v48  ;;  %v867_v16 = vcombine.high %v857_v59, %v857_v59 }
  0xe1   : > { %v1361_v19 = vrot.slane %v5180_v0, %v5000_v49  ;;  %4438 = vmatprep.mubr.msk.f32.mxu0 %vm4784_vm0, %v4785_v32  ;;  %v906_v22 = vrot.slane %v892_v9, %v5000_v49  ;;  %v907_v17 = vcombine.high %v899_v10, %v899_v10  ;;  %v876_v23 = vcombine.high %v875_v54, %v875_v54 }
  0xe2   : > { %v1166_v20 = vcombine.low %v1144_v14, %v1151_v21  ;;  %v1167_v28 = vcombine.low %v1158_v15, %v5092_v24  ;;  %v4251_v56 = vsel %vm393_vm14, 1.0, %v4785_v32  ;;  %v5206_v31 = vcombine.low %v857_v59, %v865_v26 }
  0xe3   : > { %v5208_v37 = vcombine.low %v868_v4, %v883_v6  ;;  %v908_v50 = vcombine.high %v906_v22, %v906_v22  ;;  %v5211_v39 = vrot.slane %v899_v10, %v5000_v49  ;;  %v5214_v40 = vrot.slane %v907_v17, %v5000_v49 }
  0xe4   : > { %v1174_v60 = vrot.slane %v1166_v20, %v5000_v49  ;;  %v1181_v61 = vrot.slane %v1167_v28, %v5000_v49  ;;  %v947_v21 = vrot.slane %v4251_v56, %v5000_v49  ;;  %v5219_v24 = vcombine.low %v864_v46, %v866_v12 }
  0xe5   : > { %vm394_vm15 = vcmp.eq.s32.totalorder %v373_v33, %v4997_v48  ;;  %v1200_v41 = vrot.slane %v1184_v25, %v5000_v49  ;;  %v1207_v42 = vrot.slane %v4257_v27, %v5000_v49  ;;  %v5230_v44 = vcombine.low %v867_v16, %v850_v45 }
  0xe6   : > { %v890_v51 = vrot.slane %v876_v23, %v5000_v49  ;;  %v1182_v53 = vcombine.low %v1174_v60, %v1181_v61  ;;  %v948_v54 = vcombine.high %v947_v21, %v947_v21  ;;  %v891_v46 = vcombine.high %v883_v6, %v883_v6 }
  0xe7   : > { %v1410_v59 = vrot.slane %v5208_v37, %v5000_v49  ;;  %v5236_v2 = vrot.slane %v947_v21, %v5000_v49  ;;  %v4252_v25 = vsel %vm394_vm15, 1.0, %v4785_v32  ;;  %v5240_v3 = vrot.slane %v906_v22, %v5000_v49 }
  0xe8   : > { %v5243_v62 = vrot.slane %v908_v50, %v5000_v49  ;;  %v1429_v63 = vcombine.low %v5211_v39, %v5214_v40  ;;  %4439 = vmatmul.mubr.f32.gmra.mrb[4].mxu0 %v1182_v53  ;;  %v964_v27 = vcombine.high %v4252_v25, %v4252_v25  ;;  %v5248_v45 = vrot.slane %v948_v54, %v5000_v49 }
  0xe9   : > { %4441 = vmatprep.mubr.msk.f32.mxu0 %vm4784_vm0, %v4785_v32  ;;  %v971_v26 = vrot.slane %v4252_v25, %v5000_v49  ;;  %v1215_v30 = vcombine.low %v5102_v38, %v1200_v41  ;;  %v1216_v4 = vcombine.low %v1207_v42, %v5107_v43  ;;  %v963_v6 = vcombine.high %v5236_v2, %v5236_v2 }
  0xea   : > { %v978_v9 = vrot.slane %v964_v27, %v5000_v49  ;;  %v1249_v10 = vrot.slane %v5114_v47, %v5000_v49  ;;  %v1256_v12 = vrot.slane %v5134_v29, %v5000_v49  ;;  %v5265_v22 = vcombine.low %v890_v51, %v891_v46  ;;  %v377_v47 = vpop.permute.xlu1 %376 }
  0xeb   : > { %v979_v14 = vcombine.high %v971_v26, %v971_v26  ;;  %v987_v15 = vrot.slane %v971_v26, %v5000_v49  ;;  %v1223_v16 = vrot.slane %v1215_v30, %v5000_v49  ;;  %v1230_v38 = vrot.slane %v1216_v4, %v5000_v49 }
  0xec   : > { %v4260_v43 = vcombine.high %v5211_v39, %v5214_v40  ;;  %v980_v17 = vcombine.high %v978_v9, %v978_v9  ;;  %v1263_v23 = vrot.slane %v5122_v57, %v5000_v49  ;;  %v1431_v29 = vcombine.low %v5240_v3, %v5243_v62 }
  0xed   : > { %v4261_v20 = vcombine.high %v5240_v3, %v5243_v62  ;;  %v994_v28 = vrot.slane %v978_v9, %v5000_v49  ;;  %v1231_v56 = vcombine.low %v1223_v16, %v1230_v38  ;;  %v1445_v33 = vrot.slane %v1429_v63, %v5000_v49 }
  0xee   : > { %v1478_v50 = vcombine.low %v5236_v2, %v5248_v45  ;;  %v1264_v39 = vcombine.low %v1242_v58, %v1249_v10  ;;  %v1265_v57 = vcombine.low %v1256_v12, %v1263_v23  ;;  %v1001_v40 = vrot.slane %v979_v14, %v5000_v49 }
  0xef   : > { %v1009_v60 = vcombine.high %v987_v15, %v987_v15  ;;  %v5283_v61 = vcombine.low %v963_v6, %v987_v15  ;;  %4442 = vmatmul.mubr.f32.gmra.mrb[6].mxu0 %v1231_v56  ;;  %vm395_vm1 = vcmp.eq.s32.totalorder %v377_v47, %v4997_v48  ;;  %v1008_v21 = vrot.slane %v980_v17, %v5000_v49 }
  0xf0   : > { %4444 = vmatprep.mubr.msk.f32.mxu0 %vm4784_vm0, %v4785_v32  ;;  %v1272_v41 = vrot.slane %v1264_v39, %v5000_v49  ;;  %v1279_v42 = vrot.slane %v1265_v57, %v5000_v49  ;;  %v4253_v36 = vsel %vm395_vm1, 1.0, %v4785_v32  ;;  %v1010_v58 = vcombine.high %v994_v28, %v994_v28 }
  0xf1   : > { %v1011_v51 = vcombine.high %v1001_v40, %v1001_v40  ;;  %v1019_v53 = vrot.slane %v4253_v36, %v5000_v49  ;;  %v1298_v54 = vrot.slane %v5127_v18, %v5000_v49  ;;  %v1314_v48 = vcombine.low %v5177_v55, %v5184_v5 }
  0xf2   : > { %v1280_v46 = vcombine.low %v1272_v41, %v1279_v42  ;;  %v1340_v2 = vrot.slane %v1330_v34, %v5000_v49  ;;  %v1347_v25 = vrot.slane %v4259_v52, %v5000_v49  ;;  %v1363_v55 = vcombine.low %v5187_v11, %v1361_v19 }
  0xf3   : > { %v1020_v3 = vcombine.high %v1019_v53, %v1019_v53  ;;  %v1027_v62 = vrot.slane %v1019_v53, %v5000_v49  ;;  %v1313_v18 = vcombine.low %v1291_v35, %v1298_v54  ;;  %v1328_v34 = vrot.slane %v1314_v48, %v5000_v49 }
  0xf4   : > { %4445 = vmatmul.mubr.f32.gmra.mrb[8].mxu0 %v1280_v46  ;;  %v1362_v5 = vcombine.low %v1340_v2, %v1347_v25  ;;  %v1389_v8 = vrot.slane %v5206_v31, %v5000_v49  ;;  %v1396_v13 = vrot.slane %v5230_v44, %v5000_v49  ;;  %v1012_v52 = vcombine.high %v1008_v21, %v1008_v21 }
  0xf5   : > { %v1034_v63 = vrot.slane %v1020_v3, %v5000_v49  ;;  %v1035_v7 = vcombine.high %v1027_v62, %v1027_v62  ;;  %4447 = vmatprep.mubr.msk.f32.mxu0 %vm4784_vm0, %v4785_v32  ;;  %v1321_v35 = vrot.slane %v1313_v18, %v5000_v49  ;;  %v1377_v11 = vrot.slane %v1363_v55, %v5000_v49 }
  0xf6   : > { %v1370_v0 = vrot.slane %v1362_v5, %v5000_v49  ;;  %v1403_v19 = vrot.slane %v5219_v24, %v5000_v49  ;;  %v1411_v31 = vcombine.low %v1389_v8, %v1396_v13  ;;  %v1452_v27 = vrot.slane %v4260_v43, %v5000_v49 }
  0xf7   : > { %v1480_v44 = vcombine.low %v1001_v40, %v1009_v60  ;;  %v1329_v45 = vcombine.low %v1321_v35, %v1328_v34  ;;  %v1438_v26 = vrot.slane %v5265_v22, %v5000_v49  ;;  %v1494_v30 = vrot.slane %v1478_v50, %v5000_v49 }
  0xf8   : > { %v1412_v4 = vcombine.low %v1403_v19, %v1410_v59  ;;  %v1459_v6 = vrot.slane %v1431_v29, %v5000_v49  ;;  %v1501_v9 = vrot.slane %v5283_v61, %v5000_v49  ;;  %v1526_v24 = vcombine.low %v1011_v51, %v994_v28  ;;  %v5362_v51 = vld [vmem:[#allocation2] sm:$0xff] }
  0xf9   : > { %v1527_v10 = vcombine.low %v1008_v21, %v1010_v58  ;;  %v1528_v12 = vcombine.low %v1012_v52, %v1027_v62  ;;  %4448 = vmatmul.mubr.f32.gmra.mrb[10].mxu0 %v1329_v45  ;;  %v1529_v14 = vcombine.low %v1034_v63, %v1035_v7  ;;  %v1378_v15 = vcombine.low %v1370_v0, %v1377_v11  ;;  %v2258_v58 = vld [vmem:[#allocation2 + $0x8] sm:$0xff] }
  0xfa   : > { %4450 = vmatprep.mubr.msk.f32.mxu0 %vm4784_vm0, %v4785_v32  ;;  %v1419_v16 = vrot.slane %v1411_v31, %v5000_v49  ;;  %v1460_v38 = vcombine.low %v1438_v26, %v1445_v33  ;;  %v1426_v37 = vrot.slane %v1412_v4, %v5000_v49  ;;  %v1461_v59 = vcombine.low %v1452_v27, %v1459_v6 }
  0xfb   : > { %v1487_v22 = vrot.slane %v4261_v20, %v5000_v49  ;;  %v1508_v43 = vrot.slane %v1480_v44, %v5000_v49  ;;  %v1550_v17 = vrot.slane %v1528_v12, %v5000_v49  ;;  %v1536_v47 = vrot.slane %v1526_v24, %v5000_v49  ;;  %4465 = vmatprep.subr.mxu1 %v2258_v58 }
  0xfc   : > { %v1468_v23 = vrot.slane %v1460_v38, %v5000_v49  ;;  %v1543_v29 = vrot.slane %v1527_v10, %v5000_v49  ;;  %v1557_v28 = vrot.slane %v1529_v14, %v5000_v49  ;;  %v1427_v56 = vcombine.low %v1419_v16, %v1426_v37  ;;  %4466 = vmatpush3.msra.mxu1 %v2258_v58 }
  0xfd   : > { %4451 = vmatmul.mubr.f32.gmra.mrb[12].mxu0 %v1378_v15  ;;  %v1475_v33 = vrot.slane %v1461_v59, %v5000_v49  ;;  %v1509_v20 = vcombine.low %v1487_v22, %v1494_v30  ;;  %v1510_v50 = vcombine.low %v1501_v9, %v1508_v43  ;;  %4479 = vmatprep.subr.mxu1 %v5362_v51  ;;  %vm4061_vm3 = vcmask 1042434  }
  0xfe   : > { %4453 = vmatprep.mubr.msk.f32.mxu0 %vm4784_vm0, %v4785_v32  ;;  %v1558_v39 = vcombine.low %v1536_v47, %v1543_v29  ;;  %v1559_v61 = vcombine.low %v1550_v17, %v1557_v28  ;;  %vm4063_vm4 = vcmask 1043459   ;;  %vm4065_vm5 = vcmask 1044484  }
  0xff   : > { %v1476_v57 = vcombine.low %v1468_v23, %v1475_v33  ;;  %v1517_v40 = vrot.slane %v1509_v20, %v5000_v49  ;;  %v1524_v60 = vrot.slane %v1510_v50, %v5000_v49  ;;  %vm4067_vm6 = vcmask 1045509  }
 0x100   : > { %v1566_v41 = vrot.slane %v1558_v39, %v5000_v49  ;;  %v1573_v42 = vrot.slane %v1559_v61, %v5000_v49  ;;  %vm4069_vm7 = vcmask 1046534   ;;  %vm4071_vm8 = vcmask 1047559  }
 0x101   : > { %4454 = vmatmul.mubr.f32.gmra.mrb[14].mxu0 %v1427_v56  ;;  %v1525_v21 = vcombine.low %v1517_v40, %v1524_v60 }
 0x102   : > { %4456 = vmatprep.mubr.msk.f32.mxu0 %vm4784_vm0, %v4785_v32  ;;  %v1574_v36 = vcombine.low %v1566_v41, %v1573_v42 }
 0x105   : > { %4457 = vmatmul.mubr.f32.gmra.mrb[16].mxu0 %v1476_v57 }
 0x106   : > { %4459 = vmatprep.mubr.msk.f32.mxu0 %vm4784_vm0, %v4785_v32 }
 0x109   : > { %4460 = vmatmul.mubr.f32.gmra.mrb[18].mxu0 %v1525_v21 }
 0x10a   : > { %4462 = vmatprep.mubr.msk.f32.mxu0 %vm4784_vm0, %v4785_v32 }
 0x10d   : > { %4463 = vmatmul.mubr.f32.gmra.mrb[20].mxu0 %v1574_v36 }
 0x10e   : > { %4553 = vmatprep.mubr.msk.f32.mxu0 %vm4784_vm0, %v4785_v32  ;;  %vm2651_vm0 = vcmask 64512  }
 0x1ab   : > { %v1652_v53 = vpop.f32.mrb[0].mxu0 }
 0x1ac   : > { %v1717_v54 = vcombine.high %v1652_v53, %v1652_v53  ;;  %v1724_v46 = vrot.slane %v1652_v53, %v5000_v49  ;;  %v4434_v48 = vpop.f32.mrb[1].mxu0 }
 0x1ae   : > { %v1731_v2 = vrot.slane %v1717_v54, %v5000_v49  ;;  %v1732_v25 = vcombine.high %v1724_v46, %v1724_v46  ;;  %v1740_v3 = vrot.slane %v1724_v46, %v5000_v49 }
 0x1b0   : > { %v1733_v62 = vcombine.high %v1731_v2, %v1731_v2  ;;  %v1747_v32 = vrot.slane %v1731_v2, %v5000_v49  ;;  %v1754_v18 = vrot.slane %v1732_v25, %v5000_v49  ;;  %v1762_v55 = vcombine.high %v1740_v3, %v1740_v3 }
 0x1b2   : > { %v1761_v34 = vrot.slane %v1733_v62, %v5000_v49  ;;  %v2773_v5 = vcombine.low %v1740_v3, %v1754_v18  ;;  %v4278_v8 = vcombine.high %v1740_v3, %v1754_v18  ;;  %v1763_v13 = vcombine.high %v1747_v32, %v1747_v32 }
 0x1b3   : > { %v1657_v52 = vpop.f32.mrb[2].mxu0  ;;  %v1764_v63 = vcombine.high %v1754_v18, %v1754_v18  ;;  %v2259_v7 = vcombine.low %v1754_v18, %v1762_v55 }
 0x1b4   : > { %v2775_v35 = vcombine.low %v1747_v32, %v1761_v34  ;;  %v4279_v0 = vcombine.high %v1747_v32, %v1761_v34  ;;  %v2783_v11 = vrot.slane %v2773_v5, %v5000_v49  ;;  %v5373_v19 = vrot.slane %v4278_v8, %v5000_v49  ;;  %v4437_v31 = vpop.f32.mrb[3].mxu0 }
 0x1b5   : > { %v1765_v27 = vcombine.high %v1761_v34, %v1761_v34  ;;  %v1766_v44 = vcombine.high %v1657_v52, %v1657_v52  ;;  %v1773_v45 = vrot.slane %v1657_v52, %v5000_v49  ;;  %v2260_v26 = vcombine.low %v1764_v63, %v1747_v32 }
 0x1b6   : > { %v2261_v30 = vcombine.low %v1761_v34, %v1763_v13  ;;  %v2269_v4 = vrot.slane %v2259_v7, %v5000_v49  ;;  %v5378_v6 = vrot.slane %v2775_v35, %v5000_v49  ;;  %v5381_v9 = vrot.slane %v4279_v0, %v5000_v49 }
 0x1b7   : > { %v1780_v24 = vrot.slane %v1766_v44, %v5000_v49  ;;  %v1781_v10 = vcombine.high %v1773_v45, %v1773_v45  ;;  %v1789_v12 = vrot.slane %v1773_v45, %v5000_v49  ;;  %v5386_v14 = vrot.slane %v2260_v26, %v5000_v49 }
 0x1b8   : > { %v5389_v15 = vrot.slane %v2261_v30, %v5000_v49  ;;  %v2805_v16 = vcombine.low %v2783_v11, %v5373_v19 }
 0x1b9   : > { %6297 = vst [vmem:[#allocation8_spill] sm:$0xff] %v5386_v14  ;;  %v1782_v59 = vcombine.high %v1780_v24, %v1780_v24  ;;  %v5397_v22 = vrot.slane %v1780_v24, %v5000_v49  ;;  %v1803_v43 = vrot.slane %v1781_v10, %v5000_v49  ;;  %v1811_v17 = vcombine.high %v1789_v12, %v1789_v12 }
 0x1ba   : > { %6298 = vst [vmem:[#allocation9_spill] sm:$0xff] %v5389_v15  ;;  %v2262_v23 = vcombine.low %v1765_v27, %v1789_v12  ;;  %v2291_v47 = vcombine.low %v2269_v4, %v5386_v14  ;;  %v5419_v36 = vrot.slane %v2805_v16, %v5000_v49 }
 0x1bb   : > { %v5404_v28 = vrot.slane %v1782_v59, %v5000_v49  ;;  %v1812_v56 = vcombine.high %v5397_v22, %v5397_v22  ;;  %v1813_v33 = vcombine.high %v1803_v43, %v1803_v43  ;;  %v3288_v20 = vcombine.low %v1789_v12, %v1803_v43  ;;  %v1662_v50 = vpop.f32.mrb[4].mxu0 }
 0x1bc   : > { %v5408_v39 = vcombine.low %v1803_v43, %v1811_v17  ;;  %v1815_v57 = vcombine.high %v1662_v50, %v1662_v50  ;;  %v1822_v40 = vrot.slane %v1662_v50, %v5000_v49  ;;  %v4440_v60 = vpop.f32.mrb[5].mxu0  ;;  %v5412_v61 = vrot.slane %v2262_v23, %v5000_v49 }
 0x1bd   : > { %v2308_v21 = vcombine.low %v5397_v22, %v5404_v28  ;;  %v2822_v41 = vcombine.low %v1813_v33, %v5397_v22  ;;  %v2823_v42 = vcombine.low %v5404_v28, %v1812_v56  ;;  %v4262_v58 = vcombine.high %v5397_v22, %v5404_v28 }
 0x1be   : > { %v1814_v53 = vcombine.high %v5404_v28, %v5404_v28  ;;  %v1829_v54 = vrot.slane %v1815_v57, %v5000_v49  ;;  %v1830_v46 = vcombine.high %v1822_v40, %v1822_v40  ;;  %v5429_v25 = vrot.slane %v1822_v40, %v5000_v49 }
 0x1bf   : > { %v2832_v48 = vrot.slane %v2822_v41, %v5000_v49  ;;  %v2839_v2 = vrot.slane %v2823_v42, %v5000_v49  ;;  %v2292_v3 = vcombine.low %v5389_v15, %v5412_v61  ;;  %v5434_v62 = vrot.slane %v3288_v20, %v5000_v49 }
 0x1c0   : > { %v1831_v32 = vcombine.high %v1829_v54, %v1829_v54  ;;  %v1845_v18 = vrot.slane %v1829_v54, %v5000_v49  ;;  %v5438_v55 = vrot.slane %v1830_v46, %v5000_v49  ;;  %v1860_v5 = vcombine.high %v5429_v25, %v5429_v25 }
 0x1c1   : > { %v5440_v34 = vcombine.low %v2832_v48, %v2839_v2  ;;  %v2824_v8 = vcombine.low %v1814_v53, %v5429_v25  ;;  %v2299_v13 = vrot.slane %v2291_v47, %v5000_v49  ;;  %v2306_v0 = vrot.slane %v2292_v3, %v5000_v49 }
 0x1c2   : > { %v1859_v52 = vrot.slane %v1831_v32, %v5000_v49  ;;  %v1862_v63 = vcombine.high %v5438_v55, %v5438_v55  ;;  %v2310_v7 = vcombine.low %v5429_v25, %v5438_v55  ;;  %v1667_v35 = vpop.f32.mrb[6].mxu0  ;;  %v4263_v11 = vcombine.high %v5429_v25, %v5438_v55 }
 0x1c3   : > { %v2825_v31 = vcombine.low %v5438_v55, %v1860_v5  ;;  %v2846_v27 = vrot.slane %v2824_v8, %v5000_v49  ;;  %v1864_v44 = vcombine.high %v1667_v35, %v1667_v35  ;;  %v4443_v45 = vpop.f32.mrb[7].mxu0  ;;  %v1871_v16 = vrot.slane %v1667_v35, %v5000_v49 }
 0x1c4   : > { %v4280_v30 = vcombine.high %v1845_v18, %v1859_v52  ;;  %v3313_v4 = vcombine.low %v1862_v63, %v1845_v18  ;;  %v3644_v24 = vcombine.low %v1845_v18, %v1859_v52  ;;  %v1863_v43 = vcombine.high %v1859_v52, %v1859_v52 }
 0x1c5   : > { %v2853_v10 = vrot.slane %v2825_v31, %v5000_v49  ;;  %v3321_v12 = vcombine.low %v2839_v2, %v2846_v27  ;;  %v1878_v59 = vrot.slane %v1864_v44, %v5000_v49  ;;  %v2307_v47 = vcombine.low %v2299_v13, %v2306_v0 }
 0x1c6   : > { %v5462_v17 = vrot.slane %v4280_v30, %v5000_v49  ;;  %v3320_v23 = vrot.slane %v3313_v4, %v5000_v49  ;;  %v5466_v33 = vrot.slane %v3644_v24, %v5000_v49  ;;  %v1879_v20 = vcombine.high %v1871_v16, %v1871_v16 }
 0x1c7   : > { %v2855_v56 = vcombine.low %v2846_v27, %v2853_v10  ;;  %v1880_v50 = vcombine.high %v1878_v59, %v1878_v59  ;;  %v1672_v57 = vpop.f32.mrb[8].mxu0  ;;  %v5471_v60 = vrot.slane %v1871_v16, %v5000_v49  ;;  %v5474_v41 = vrot.slane %v1878_v59, %v5000_v49  ;;  %4467 = vmatprep.mubr.msk.f32.mxu1 %vm2651_vm0, %v2307_v47 }
 0x1c8   : > { %v5468_v40 = vcombine.low %v2853_v10, %v3320_v23  ;;  %v1913_v42 = vcombine.high %v1672_v57, %v1672_v57  ;;  %v4446_v53 = vpop.f32.mrb[9].mxu0  ;;  %v5478_v54 = vrot.slane %v3321_v12, %v5000_v49  ;;  %v5481_v46 = vrot.slane %v1879_v20, %v5000_v49 }
 0x1c9   : > { %v5484_v48 = vrot.slane %v1880_v50, %v5000_v49  ;;  %v1920_v2 = vrot.slane %v1672_v57, %v5000_v49  ;;  %v5488_v3 = vrot.slane %v2855_v56, %v5000_v49  ;;  %v1909_v18 = vcombine.high %v5471_v60, %v5471_v60 }
 0x1ca   : > { %v5495_v5 = vcombine.low %v1863_v43, %v5471_v60  ;;  %v1911_v13 = vcombine.high %v5481_v46, %v5481_v46  ;;  %v1927_v27 = vrot.slane %v1913_v42, %v5000_v49  ;;  %v3626_v53 = vrot.slane %v5408_v39, %v5000_v49 }
 0x1cb   : > { %v5506_v35 = vcombine.low %v5481_v46, %v1909_v18  ;;  %v1912_v31 = vcombine.high %v5484_v48, %v5484_v48  ;;  %v1928_v30 = vcombine.high %v1920_v2, %v1920_v2  ;;  %v1936_v4 = vrot.slane %v1920_v2, %v5000_v49 }
 0x1cc   : > { %v1677_v44 = vpop.f32.mrb[10].mxu0  ;;  %v5517_v12 = vcombine.low %v1911_v13, %v5474_v41  ;;  %v1929_v16 = vcombine.high %v1927_v27, %v1927_v27  ;;  %v5520_v59 = vrot.slane %v1927_v27, %v5000_v49  ;;  %v5557_v32 = vcombine.low %v5412_v61, %v3626_v53 }
 0x1cd   : > { %v1962_v24 = vcombine.high %v1677_v44, %v1677_v44  ;;  %v4449_v10 = vpop.f32.mrb[11].mxu0  ;;  %v1969_v43 = vrot.slane %v1677_v44, %v5000_v49  ;;  %v1950_v23 = vrot.slane %v1928_v30, %v5000_v49  ;;  %v1958_v47 = vcombine.high %v1936_v4, %v1936_v4 }
 0x1ce   : > { %v5524_v56 = vcombine.low %v1912_v31, %v1936_v4  ;;  %v5528_v50 = vrot.slane %v1929_v16, %v5000_v49  ;;  %6300 = vst [vmem:[#allocation11_spill] sm:$0xff] %v5557_v32  ;;  %v2339_v22 = vrot.slane %v4263_v11, %v5000_v49 }
 0x1cf   : > { %v1976_v20 = vrot.slane %v1962_v24, %v5000_v49  ;;  %v1977_v57 = vcombine.high %v1969_v43, %v1969_v43  ;;  %v1985_v42 = vrot.slane %v1969_v43, %v5000_v49  ;;  %v1960_v13 = vcombine.high %v1950_v23, %v1950_v23 }
 0x1d0   : > { %6299 = vst [vmem:[#allocation10_spill] sm:$0xff] %v5524_v56  ;;  %v1682_v2 = vpop.f32.mrb[12].mxu0  ;;  %v4264_v27 = vcombine.high %v1936_v4, %v1950_v23  ;;  %v5535_v44 = vcombine.low %v1950_v23, %v1958_v47  ;;  %v1961_v10 = vcombine.high %v5528_v50, %v5528_v50  ;;  %v3653_v39 = vcombine.low %v2339_v22, %v5466_v33 }
 0x1d1   : > { %v4452_v31 = vpop.f32.mrb[13].mxu0  ;;  %v1978_v16 = vcombine.high %v1976_v20, %v1976_v20  ;;  %v5549_v4 = vcombine.low %v1960_v13, %v5520_v59  ;;  %v1992_v23 = vrot.slane %v1976_v20, %v5000_v49  ;;  %v1999_v47 = vrot.slane %v1977_v57, %v5000_v49 }
 0x1d2   : > { %v5546_v43 = vrot.slane %v4264_v27, %v5000_v49  ;;  %v2007_v1 = vcombine.high %v1985_v42, %v1985_v42  ;;  %v5554_v24 = vcombine.low %v1961_v10, %v1985_v42  ;;  %v2011_v37 = vcombine.high %v1682_v2, %v1682_v2 }
 0x1d3   : > { %v2006_v31 = vrot.slane %v1978_v16, %v5000_v49  ;;  %v2008_v45 = vcombine.high %v1992_v23, %v1992_v23  ;;  %v2018_v27 = vrot.slane %v1682_v2, %v5000_v49  ;;  %v2409_v13 = vcombine.low %v1985_v42, %v1999_v47 }
 0x1d4   : > { %v1687_v29 = vpop.f32.mrb[14].mxu0  ;;  %v5560_v20 = vcombine.low %v1999_v47, %v2007_v1  ;;  %v2025_v52 = vrot.slane %v2011_v37, %v5000_v49 }
 0x1d5   : > { %v4455_v18 = vpop.f32.mrb[15].mxu0  ;;  %v2969_v0 = vcombine.low %v1992_v23, %v2006_v31  ;;  %v4282_v63 = vcombine.high %v1992_v23, %v2006_v31  ;;  %v5564_v16 = vcombine.low %v2006_v31, %v2008_v45  ;;  %v2010_v10 = vcombine.high %v2006_v31, %v2006_v31 }
 0x1d6   : > { %6301 = vst [vmem:[#allocation12_spill] sm:$0xff] %v5560_v20  ;;  %v5568_v61 = vrot.slane %v2409_v13, %v5000_v49  ;;  %v4304_v18 = vcombine.high %v1985_v42, %v1999_v47  ;;  %v2026_v45 = vcombine.high %v2018_v27, %v2018_v27  ;;  %v2027_v57 = vcombine.high %v2025_v52, %v2025_v52 }
 0x1d7   : > { %v5571_v53 = vrot.slane %v2969_v0, %v5000_v49  ;;  %v5574_v2 = vrot.slane %v4282_v63, %v5000_v49  ;;  %v5581_v31 = vrot.slane %v2018_v27, %v5000_v49  ;;  %v2041_v13 = vrot.slane %v2025_v52, %v5000_v49 }
 0x1d8   : > { %6302 = vst [vmem:[#allocation13_spill] sm:$0xff] %v5568_v61  ;;  %v5576_v1 = vpop.f32.mrb[16].mxu0  ;;  %v2318_v63 = vrot.slane %v2308_v21, %v5000_v49  ;;  %v2325_v0 = vrot.slane %v4262_v58, %v5000_v49  ;;  %v2332_v42 = vrot.slane %v2310_v7, %v5000_v49  ;;  %v5597_v47 = vrot.slane %v2026_v45, %v5000_v49 }
 0x1d9   : > { %v4458_v37 = vpop.f32.mrb[17].mxu0  ;;  %v2055_v52 = vrot.slane %v2027_v57, %v5000_v49  ;;  %v2056_v27 = vcombine.high %v5581_v31, %v5581_v31  ;;  %v5603_v21 = vcombine.low %v2010_v10, %v5581_v31  ;;  %v5612_v45 = vrot.slane %v4304_v18, %v5000_v49 }
 0x1da   : > { %v2057_v37 = vcombine.high %v2041_v13, %v2041_v13  ;;  %v2340_v28 = vcombine.low %v2318_v63, %v2325_v0  ;;  %v3652_v58 = vcombine.low %v2325_v0, %v2332_v42  ;;  %v2058_v57 = vcombine.high %v5597_v47, %v5597_v47 }
 0x1db   : > { %6303 = vst [vmem:[#allocation14_spill] sm:$0xff] %v5612_v45  ;;  %v2059_v23 = vcombine.high %v2055_v52, %v2055_v52  ;;  %v5617_v10 = vcombine.low %v5597_v47, %v2056_v27  ;;  %v3388_v55 = vcombine.low %v2041_v13, %v2055_v52  ;;  %v2341_v11 = vcombine.low %v2332_v42, %v2339_v22 }
 0x1dc   : > { %v5609_v7 = vpop.f32.mrb[18].mxu0  ;;  %v2458_v63 = vcombine.low %v2058_v57, %v2041_v13  ;;  %v5623_v0 = vcombine.low %v2055_v52, %v2057_v37  ;;  %v2348_v18 = vrot.slane %v2340_v28, %v5000_v49  ;;  %v5629_v27 = vrot.slane %v3652_v58, %v5000_v49 }
 0x1dd   : > { %v4461_v26 = vpop.f32.mrb[19].mxu0  ;;  %v2355_v30 = vrot.slane %v2341_v11, %v5000_v49  ;;  %v2067_v38 = vrot.slane %v1687_v29, %v5000_v49  ;;  %v5638_v13 = vrot.slane %v3388_v55, %v5000_v49  ;;  %v6308_v42 = vcombine.high %v5474_v41, %v5474_v41 }
 0x1de   : > { %6304 = vst [vmem:[#allocation15_spill] sm:$0xff] %v5623_v0  ;;  %6305 = vst [vmem:[#allocation16_spill] sm:$0xff] %v5629_v27  ;;  %v2060_v26 = vcombine.high %v1687_v29, %v1687_v29  ;;  %v5635_v25 = vrot.slane %v2458_v63, %v5000_v49  ;;  %v2367_v52 = vrot.slane %v5495_v5, %v5000_v49 }
 0x1df   : > { %6307 = vst [vmem:[#allocation18_spill] sm:$0xff] %v5638_v13  ;;  %v2360_v33 = vcombine.low %v5484_v48, %v6308_v42  ;;  %v2356_v22 = vcombine.low %v2348_v18, %v2355_v30  ;;  %v2075_v28 = vcombine.high %v2067_v38, %v2067_v38  ;;  %v5648_v58 = vrot.slane %v2067_v38, %v5000_v49  ;;  %v5663_v30 = vld [vmem:[#allocation2 + $0x10] sm:$0xff] }
 0x1e0   : > { %v5632_v8 = vpop.f32.mrb[20].mxu0  ;;  %6306 = vst [vmem:[#allocation17_spill] sm:$0xff] %v5635_v25  ;;  %v2074_v29 = vrot.slane %v2060_v26, %v5000_v49  ;;  %v5652_v57 = vrot.slane %v5506_v35, %v5000_v49  ;;  %v5656_v55 = vrot.slane %v5517_v12, %v5000_v49  ;;  %v2109_v5 = vcombine.high %v5576_v1, %v5576_v1 }
 0x1e1   : > { %v4464_v37 = vpop.f32.mrb[21].mxu0  ;;  %v5659_v11 = vrot.slane %v2360_v33, %v5000_v49  ;;  %4468 = vmatmul.mubr.msk.f32.vlgmr.msra.gmra.mrb[0].mxu1 %vm2651_vm0, %v2356_v22  ;;  %v5670_v35 = vrot.slane %v2075_v28, %v5000_v49  ;;  %v2105_v12 = vcombine.high %v5648_v58, %v5648_v58  ;;  %v5675_v18 = vcombine.low %v2059_v23, %v5648_v58 }
 0x1e2   : > { %6309 = vst [vmem:[#allocation19_spill] sm:$0xff] %v5652_v57  ;;  %6310 = vst [vmem:[#allocation20_spill] sm:$0xff] %v5656_v55  ;;  %v2076_v38 = vcombine.high %v2074_v29, %v2074_v29  ;;  %v5667_v63 = vrot.slane %v2074_v29, %v5000_v49  ;;  %v2389_v26 = vcombine.low %v2367_v52, %v5652_v57  ;;  %4480 = vmatpush3.msra.mxu1 %v5362_v51 }
 0x1e3   : > { %6311 = vst [vmem:[#allocation21_spill] sm:$0xff] %v5659_v11  ;;  %v2390_v42 = vcombine.low %v5656_v55, %v5659_v11  ;;  %v2116_v33 = vrot.slane %v5576_v1, %v5000_v49  ;;  %v5684_v37 = vrot.slane %v3653_v39, %v5000_v49  ;;  %v2107_v52 = vcombine.high %v5670_v35, %v5670_v35 }
 0x1e4   : > { %v5687_v22 = vrot.slane %v2076_v38, %v5000_v49  ;;  %4493 = vmatprep.subr.mxu1 %v5663_v30  ;;  %v2397_v39 = vrot.slane %v2389_v26, %v5000_v49  ;;  %v5705_v23 = vcombine.low %v5670_v35, %v2105_v12  ;;  %v2123_v45 = vrot.slane %v2109_v5, %v5000_v49 }
 0x1e5   : > { %6312 = vst [vmem:[#allocation22_spill] sm:$0xff] %v5684_v37  ;;  %v2404_v1 = vrot.slane %v2390_v42, %v5000_v49  ;;  %v2124_v51 = vcombine.high %v2116_v33, %v2116_v33  ;;  %v2132_v26 = vrot.slane %v2116_v33, %v5000_v49  ;;  %v5712_v42 = vcombine.low %v2107_v52, %v5667_v63 }
 0x1e6   : > { %v2108_v0 = vcombine.high %v5687_v22, %v5687_v22  ;;  %v2158_v28 = vcombine.high %v5609_v7, %v5609_v7  ;;  %v2165_v38 = vrot.slane %v5609_v7, %v5000_v49  ;;  %v6313_v12 = vcombine.low %v5520_v59, %v5528_v50 }
 0x1e7   : > { %v2405_v29 = vcombine.low %v2397_v39, %v2404_v1  ;;  %v2125_v5 = vcombine.high %v2123_v45, %v2123_v45  ;;  %v5726_v33 = vrot.slane %v2123_v45, %v5000_v49  ;;  %v2146_v52 = vrot.slane %v2124_v51, %v5000_v49 }
 0x1e8   : > { %v5722_v11 = vrot.slane %v6313_v12, %v5000_v49  ;;  %v5729_v39 = vcombine.low %v2108_v0, %v2132_v26  ;;  %v2172_v1 = vrot.slane %v2158_v28, %v5000_v49  ;;  %v2173_v56 = vcombine.high %v2165_v38, %v2165_v38 }
 0x1e9   : > { %4470 = vmatprep.mubr.msk.f32.mxu1 %vm2651_vm0, %v2405_v29  ;;  %v5733_v7 = vrot.slane %v2165_v38, %v5000_v49  ;;  %v6316_v12 = vcombine.high %v5520_v59, %v5528_v50  ;;  %v5742_v29 = vrot.slane %v2125_v5, %v5000_v49  ;;  %v2156_v45 = vcombine.high %v2146_v52, %v2146_v52 }
 0x1ea   : > { %6314 = vst [vmem:[#allocation23_spill] sm:$0xff] %v5722_v11  ;;  %6315 = vst [vmem:[#allocation24_spill] sm:$0xff] %v5729_v39  ;;  %v4284_v55 = vcombine.high %v2132_v26, %v2146_v52  ;;  %v2438_v0 = vcombine.low %v5546_v43, %v5722_v11  ;;  %v3744_v28 = vcombine.low %v2132_v26, %v2146_v52 }
 0x1eb   : > { %v5739_v57 = vrot.slane %v6316_v12, %v5000_v49  ;;  %v2174_v38 = vcombine.high %v2172_v1, %v2172_v1  ;;  %v2188_v27 = vrot.slane %v2172_v1, %v5000_v49  ;;  %v5750_v37 = vcombine.low %v2156_v45, %v5726_v33 }
 0x1ec   : > { %v5759_v43 = vrot.slane %v4284_v55, %v5000_v49  ;;  %v2157_v26 = vcombine.high %v5742_v29, %v5742_v29  ;;  %v5764_v52 = vrot.slane %v2173_v56, %v5000_v49  ;;  %v5768_v45 = vrot.slane %v3744_v28, %v5000_v49 }
 0x1ed   : > { %6317 = vst [vmem:[#allocation25_spill] sm:$0xff] %v5739_v57  ;;  %v2202_v1 = vrot.slane %v2174_v38, %v5000_v49  ;;  %v2203_v5 = vcombine.high %v5733_v7, %v5733_v7  ;;  %v2204_v12 = vcombine.high %v2188_v27, %v2188_v27  ;;  %v2439_v32 = vcombine.low %v5739_v57, %v5568_v61 }
 0x1ee   : > { %6318 = vst [vmem:[#allocation26_spill] sm:$0xff] %v5768_v45  ;;  %v2205_v55 = vcombine.high %v5764_v52, %v5764_v52  ;;  %v2555_v51 = vcombine.low %v2157_v26, %v5733_v7  ;;  %v2446_v56 = vrot.slane %v2438_v0, %v5000_v49  ;;  %v2207_v26 = vcombine.high %v5632_v8, %v5632_v8 }
 0x1ef   : > { %v4268_v11 = vcombine.high %v2188_v27, %v2202_v1  ;;  %v2206_v15 = vcombine.high %v2202_v1, %v2202_v1  ;;  %v2556_v38 = vcombine.low %v5764_v52, %v2203_v5  ;;  %v5781_v45 = vcombine.low %v2202_v1, %v2204_v12 }
 0x1f0   : > { %v2453_v57 = vrot.slane %v2439_v32, %v5000_v49  ;;  %v2214_v0 = vrot.slane %v5632_v8, %v5000_v49  ;;  %v2465_v5 = vrot.slane %v5564_v16, %v5000_v49  ;;  %v5795_v12 = vrot.slane %v5603_v21, %v5000_v49 }
 0x1f1   : > { %v2612_v14 = vrot.slane %v4268_v11, %v5000_v49  ;;  %v5799_v11 = vrot.slane %v5617_v10, %v5000_v49  ;;  %v5801_v1 = vcombine.low %v2205_v55, %v2188_v27  ;;  %v2221_v61 = vrot.slane %v2207_v26, %v5000_v49 }
 0x1f2   : > { %6319 = vst [vmem:[#allocation27_spill] sm:$0xff] %v5795_v12  ;;  %v2454_v32 = vcombine.low %v2446_v56, %v2453_v57  ;;  %v6322_v8 = vcombine.low %v5648_v58, %v5670_v35  ;;  %v2222_v39 = vcombine.high %v2214_v0, %v2214_v0  ;;  %v2230_v16 = vrot.slane %v2214_v0, %v5000_v49 }
 0x1f3   : > { %6320 = vst [vmem:[#allocation28_spill] sm:$0xff] %v5799_v11  ;;  %6321 = vst [vmem:[#allocation29_spill] sm:$0xff] %v5801_v1  ;;  %v2487_v21 = vcombine.low %v2465_v5, %v5795_v12  ;;  %v2488_v13 = vcombine.low %v5799_v11, %v5635_v25  ;;  %v2223_v10 = vcombine.high %v2221_v61, %v2221_v61 }
 0x1f4   : > { %v2514_v28 = vrot.slane %v6322_v8, %v5000_v49  ;;  %4471 = vmatmul.mubr.msk.f32.gmra.mrb[2].mxu1 %vm2651_vm0, %v2454_v32  ;;  %v5814_v27 = vrot.slane %v2221_v61, %v5000_v49  ;;  %v6324_v57 = vcombine.high %v5648_v58, %v5670_v35  ;;  %v6325_v56 = vcombine.low %v5667_v63, %v5687_v22 }
 0x1f5   : > { %v2244_v0 = vrot.slane %v2222_v39, %v5000_v49  ;;  %v2252_v5 = vcombine.high %v2230_v16, %v2230_v16  ;;  %v5829_v32 = vcombine.low %v2206_v15, %v2230_v16  ;;  %v2495_v61 = vrot.slane %v2487_v21, %v5000_v49 }
 0x1f6   : > { %6323 = vst [vmem:[#allocation30_spill] sm:$0xff] %v5814_v27  ;;  %v5820_v55 = vrot.slane %v6324_v57, %v5000_v49  ;;  %v5826_v26 = vrot.slane %v6325_v56, %v5000_v49  ;;  %v5833_v8 = vrot.slane %v2223_v10, %v5000_v49  ;;  %v2253_v58 = vcombine.high %v5814_v27, %v5814_v27 }
 0x1f7   : > { %v2502_v35 = vrot.slane %v2488_v13, %v5000_v49  ;;  %v6326_v57 = vcombine.high %v5667_v63, %v5687_v22  ;;  %v2254_v39 = vcombine.high %v2244_v0, %v2244_v0  ;;  %v2603_v25 = vcombine.low %v2230_v16, %v2244_v0 }
 0x1f8   : > { %v4269_v21 = vcombine.high %v2230_v16, %v2244_v0  ;;  %v2605_v10 = vcombine.low %v5814_v27, %v5833_v8  ;;  %v5848_v12 = vcombine.low %v2244_v0, %v2252_v5  ;;  %v5851_v11 = vcombine.low %v5833_v8, %v2253_v58 }
 0x1f9   : > { %v5842_v56 = vrot.slane %v6326_v57, %v5000_v49  ;;  %v2503_v13 = vcombine.low %v2495_v61, %v2502_v35  ;;  %v5854_v20 = vcombine.low %v2254_v39, %v5814_v27  ;;  %v2536_v57 = vcombine.low %v2514_v28, %v5820_v55 }
 0x1fa   : > { %v6327_v16 = vcombine.high %v5726_v33, %v5726_v33  ;;  %v2563_v0 = vrot.slane %v5750_v37, %v5000_v49  ;;  %v5867_v5 = vrot.slane %v2555_v51, %v5000_v49  ;;  %v5870_v61 = vrot.slane %v2556_v38, %v5000_v49 }
 0x1fb   : > { %v2537_v15 = vcombine.low %v5826_v26, %v5842_v56  ;;  %4473 = vmatprep.mubr.msk.f32.mxu1 %vm2651_vm0, %v2503_v13  ;;  %v5873_v28 = vrot.slane %v2603_v25, %v5000_v49  ;;  %v2544_v58 = vrot.slane %v2536_v57, %v5000_v49  ;;  %v5881_v13 = vrot.slane %v4269_v21, %v5000_v49 }
 0x1fc   : > { %v2554_v1 = vcombine.low %v5742_v29, %v6327_v16  ;;  %v2586_v37 = vcombine.low %v5867_v5, %v5870_v61  ;;  %v5886_v51 = vrot.slane %v2605_v10, %v5000_v49  ;;  %v6329_v25 = vcombine.low %v5378_v6, %v5381_v9 }
 0x1fd   : > { %6328 = vst [vmem:[#allocation31_spill] sm:$0xff] %v5873_v28  ;;  %v2551_v35 = vrot.slane %v2537_v15, %v5000_v49  ;;  %v2634_v38 = vcombine.low %v2612_v14, %v5873_v28  ;;  %v6330_v21 = vrot.slane %v5440_v34, %v5000_v49  ;;  %v6331_v10 = vcombine.low %v5471_v60, %v5481_v46 }
 0x1fe   : > { %v5878_v39 = vrot.slane %v2554_v1, %v5000_v49  ;;  %v2820_v57 = vrot.slane %v6329_v25, %v5000_v49  ;;  %v2600_v14 = vrot.slane %v2586_v37, %v5000_v49  ;;  %v2635_v28 = vcombine.low %v5881_v13, %v5886_v51 }
 0x1ff   : > { %v2552_v15 = vcombine.low %v2544_v58, %v2551_v35  ;;  %v2870_v16 = vcombine.low %v6330_v21, %v5488_v3  ;;  %v5902_v27 = vrot.slane %v6331_v10, %v5000_v49  ;;  %v2642_v58 = vrot.slane %v2634_v38, %v5000_v49 }
 0x200   : > { %v2585_v1 = vcombine.low %v2563_v0, %v5878_v39  ;;  %v2821_v0 = vcombine.low %v5419_v36, %v2820_v57  ;;  %v6332_v3 = vcombine.high %v5471_v60, %v5481_v46  ;;  %v6333_v37 = vcombine.low %v5474_v41, %v5484_v48 }
 0x201   : > { %4474 = vmatmul.mubr.msk.f32.gmra.mrb[4].mxu1 %vm2651_vm0, %v2552_v15  ;;  %v2903_v38 = vcombine.low %v5462_v17, %v5902_v27  ;;  %v2649_v36 = vrot.slane %v2635_v28, %v5000_v49  ;;  %v6334_v57 = vcombine.high %v5520_v59, %v5520_v59  ;;  %v5932_v60 = vrot.slane %v5549_v4, %v5000_v49 }
 0x202   : > { %v2593_v34 = vrot.slane %v2585_v1, %v5000_v49  ;;  %v5915_v35 = vrot.slane %v6332_v3, %v5000_v49  ;;  %v5921_v25 = vrot.slane %v6333_v37, %v5000_v49  ;;  %v5936_v46 = vrot.slane %v5554_v24, %v5000_v49 }
 0x203   : > { %v2922_v15 = vcombine.low %v5528_v50, %v6334_v57  ;;  %v2911_v17 = vrot.slane %v2903_v38, %v5000_v49  ;;  %v6335_v59 = vcombine.low %v5581_v31, %v5597_v47  ;;  %v2650_v50 = vcombine.low %v2642_v58, %v2649_v36 }
 0x204   : > { %v2601_v1 = vcombine.low %v2593_v34, %v2600_v14  ;;  %v2904_v21 = vcombine.low %v5915_v35, %v5921_v25  ;;  %v6336_v24 = vrot.slane %v5535_v44, %v5000_v49  ;;  %v6337_v14 = vcombine.high %v5581_v31, %v5597_v47 }
 0x205   : > { %v5945_v28 = vrot.slane %v6335_v59, %v5000_v49  ;;  %v2944_v4 = vrot.slane %v2922_v15, %v5000_v49  ;;  %v3001_v58 = vcombine.low %v5571_v53, %v5574_v2  ;;  %v6338_v37 = vcombine.high %v5667_v63, %v5667_v63 }
 0x206   : > { %v2952_v10 = vcombine.low %v6336_v24, %v5932_v60  ;;  %v5956_v34 = vrot.slane %v6337_v14, %v5000_v49  ;;  %4476 = vmatprep.mubr.msk.f32.mxu1 %vm2651_vm0, %v2601_v1  ;;  %v2918_v3 = vrot.slane %v2904_v21, %v5000_v49  ;;  %v3028_v44 = vrot.slane %v5675_v18, %v5000_v49  ;;  %v6003_v14 = vld [vmem:[#allocation2 + $0x18] sm:$0xff] }
 0x207   : > { %v3021_v38 = vcombine.low %v5687_v22, %v6338_v37  ;;  %4477 = vmatmul.mubr.msk.f32.gmra.mrb[6].mxu1 %vm2651_vm0, %v2650_v50  ;;  %v2953_v31 = vcombine.low %v2944_v4, %v5936_v46  ;;  %v5975_v53 = vrot.slane %v5705_v23, %v5000_v49  ;;  %v3009_v22 = vrot.slane %v3001_v58, %v5000_v49 }
 0x208   : > { %v2960_v47 = vrot.slane %v2952_v10, %v5000_v49  ;;  %v3002_v36 = vcombine.low %v5945_v28, %v5956_v34  ;;  %4481 = vmatprep.mubr.msk.f32.mxu1 %vm2651_vm0, %v2821_v0  ;;  %v2919_v63 = vcombine.low %v2911_v17, %v2918_v3  ;;  %v3042_v18 = vrot.slane %v5712_v42, %v5000_v49 }
 0x209   : > { %v3049_v57 = vrot.slane %v3021_v38, %v5000_v49  ;;  %v2967_v15 = vrot.slane %v2953_v31, %v5000_v49  ;;  %v3050_v21 = vcombine.low %v3028_v44, %v5975_v53  ;;  %v6339_v23 = vcombine.low %v5726_v33, %v5742_v29 }
 0x20a   : > { %v3016_v1 = vrot.slane %v3002_v36, %v5000_v49  ;;  %v6340_v17 = vcombine.high %v5726_v33, %v5742_v29  ;;  %v6341_v50 = vcombine.low %v5733_v7, %v5764_v52  ;;  %v3126_v10 = vrot.slane %v5781_v45, %v5000_v49 }
 0x20b   : > { %v5989_v59 = vrot.slane %v6339_v23, %v5000_v49  ;;  %v3051_v0 = vcombine.low %v3042_v18, %v3049_v57  ;;  %4482 = vmatmul.mubr.msk.f32.vlgmr.msra.gmra.mrb[0].mxu1 %vm2651_vm0, %v2870_v16  ;;  %v2968_v3 = vcombine.low %v2960_v47, %v2967_v15  ;;  %v3058_v37 = vrot.slane %v3050_v21, %v5000_v49 }
 0x20c   : > { %v3091_v42 = vrot.slane %v6340_v17, %v5000_v49  ;;  %v5999_v24 = vrot.slane %v6341_v50, %v5000_v49  ;;  %v3017_v58 = vcombine.low %v3009_v22, %v3016_v1  ;;  %4494 = vmatpush3.msra.mxu1 %v5663_v30  ;;  %4484 = vmatprep.mubr.msk.f32.mxu1 %vm2651_vm0, %v2919_v63 }
 0x20d   : > { %v3099_v33 = vcombine.low %v5759_v43, %v5989_v59  ;;  %v3065_v29 = vrot.slane %v3051_v0, %v5000_v49  ;;  %v3133_v45 = vrot.slane %v5829_v32, %v5000_v49  ;;  %v3140_v44 = vrot.slane %v5848_v12, %v5000_v49  ;;  %4507 = vmatprep.subr.mxu1 %v6003_v14  ;;  %v6345_v0 = vld [vmem:[#allocation12_spill] sm:$0xff] }
 0x20e   : > { %v3100_v38 = vcombine.low %v3091_v42, %v5999_v24  ;;  %v3147_v31 = vrot.slane %v5854_v20, %v5000_v49  ;;  %v3297_v30 = vcombine.low %v5381_v9, %v5434_v62  ;;  %v6342_v32 = vcombine.low %v5373_v19, %v5378_v6 }
 0x20f   : > { %v3107_v16 = vrot.slane %v3099_v33, %v5000_v49  ;;  %v3066_v43 = vcombine.low %v3058_v37, %v3065_v29  ;;  %v3148_v36 = vcombine.low %v3126_v10, %v3133_v45  ;;  %4485 = vmatmul.mubr.msk.f32.gmra.mrb[2].mxu1 %vm2651_vm0, %v2968_v3  ;;  %v6343_v20 = vrot.slane %v5468_v40, %v5000_v49  ;;  %v6348_v37 = vld [vmem:[#allocation24_spill] sm:$0xff] }
 0x210   : > { %v3114_v47 = vrot.slane %v3100_v38, %v5000_v49  ;;  %v3304_v63 = vrot.slane %v6342_v32, %v5000_v49  ;;  %v3149_v12 = vcombine.low %v3140_v44, %v3147_v31  ;;  %v3311_v22 = vrot.slane %v3297_v30, %v5000_v49  ;;  %4487 = vmatprep.mubr.msk.f32.mxu1 %vm2651_vm0, %v3017_v58 }
 0x211   : > { %v3337_v9 = vcombine.low %v5478_v54, %v6343_v20  ;;  %v6344_v62 = vcombine.high %v5474_v41, %v5484_v48  ;;  %v3156_v19 = vrot.slane %v3148_v36, %v5000_v49  ;;  %v3346_v6 = vcombine.low %v5902_v27, %v5915_v35  ;;  %v6347_v27 = vld [vmem:[#allocation18_spill] sm:$0xff]  ;;  %v6352_v36 = vld [vmem:[#allocation9_spill] sm:$0xff]  ;;  %v6356_v20 = vld [vmem:[#allocation16_spill] sm:$0xff] }
 0x212   : > { %v3115_v1 = vcombine.low %v3107_v16, %v3114_v47  ;;  %v3371_v21 = vcombine.low %v5932_v60, %v2944_v4  ;;  %v3163_v23 = vrot.slane %v3149_v12, %v5000_v49  ;;  %v3312_v40 = vcombine.low %v3304_v63, %v3311_v22 }
 0x213   : > { %v3345_v15 = vrot.slane %v6344_v62, %v5000_v49  ;;  %v6346_v17 = vrot.slane %v6345_v0, %v5000_v49  ;;  %v3354_v48 = vrot.slane %v3346_v6, %v5000_v49  ;;  %v3396_v10 = vcombine.low %v5574_v2, %v5945_v28  ;;  %4488 = vmatmul.mubr.msk.f32.gmra.mrb[4].mxu1 %vm2651_vm0, %v3066_v43  ;;  %v6359_v6 = vld [vmem:[#allocation10_spill] sm:$0xff] }
 0x214   : > { %v3379_v50 = vrot.slane %v3371_v21, %v5000_v49  ;;  %v3397_v35 = vcombine.low %v5956_v34, %v6347_v27  ;;  %v3164_v60 = vcombine.low %v3156_v19, %v3163_v23  ;;  %v3421_v3 = vcombine.low %v5975_v53, %v3042_v18  ;;  %4490 = vmatprep.mubr.msk.f32.mxu1 %vm2651_vm0, %v3115_v1  ;;  %v6358_v1 = vld [vmem:[#allocation19_spill] sm:$0xff]  ;;  %v6361_v23 = vld [vmem:[#allocation21_spill] sm:$0xff] }
 0x215   : > { %v3347_v54 = vcombine.low %v5921_v25, %v3345_v15  ;;  %v3372_v41 = vcombine.low %v5936_v46, %v6346_v17  ;;  %v3404_v46 = vrot.slane %v3396_v10, %v5000_v49  ;;  %v6349_v2 = vrot.slane %v6348_v37, %v5000_v49  ;;  %v6362_v17 = vld [vmem:[#allocation25_spill] sm:$0xff] }
 0x216   : > { %v3411_v58 = vrot.slane %v3397_v35, %v5000_v49  ;;  %v6350_v34 = vcombine.high %v5733_v7, %v5764_v52  ;;  %v3429_v16 = vrot.slane %v3421_v3, %v5000_v49  ;;  %v3446_v53 = vcombine.low %v5989_v59, %v3091_v42  ;;  %v6351_v52 = vld [vmem:[#allocation8_spill] sm:$0xff]  ;;  %v6354_v59 = vld [vmem:[#allocation11_spill] sm:$0xff] }
 0x217   : > { %v3361_v25 = vrot.slane %v3347_v54, %v5000_v49  ;;  %v3386_v4 = vrot.slane %v3372_v41, %v5000_v49  ;;  %v3422_v28 = vcombine.low %v3049_v57, %v6349_v2  ;;  %v3470_v47 = vrot.slane %v5851_v11, %v5000_v49  ;;  %4491 = vmatmul.mubr.msk.f32.gmra.mrb[6].mxu1 %vm2651_vm0, %v3164_v60  ;;  %v6355_v11 = vld [vmem:[#allocation22_spill] sm:$0xff]  ;;  %v6363_v41 = vld [vmem:[#allocation23_spill] sm:$0xff] }
 0x218   : > { %v3445_v33 = vrot.slane %v6350_v34, %v5000_v49  ;;  %v3412_v18 = vcombine.low %v3404_v46, %v3411_v58  ;;  %v3454_v57 = vrot.slane %v3446_v53, %v5000_v49  ;;  %v3471_v7 = vcombine.low %v3133_v45, %v3140_v44  ;;  %4495 = vmatprep.mubr.msk.f32.mxu1 %vm2651_vm0, %v3312_v40  ;;  %v6357_v44 = vld [vmem:[#allocation20_spill] sm:$0xff]  ;;  %v6366_v60 = vld [vmem:[#allocation15_spill] sm:$0xff]  ;;  %v6370_v53 = vld [vmem:[#allocation26_spill] sm:$0xff] }
 0x219   : > { %v3362_v29 = vcombine.low %v3354_v48, %v3361_v25  ;;  %v3387_v38 = vcombine.low %v3379_v50, %v3386_v4  ;;  %v3436_v30 = vrot.slane %v3422_v28, %v5000_v49  ;;  %v6353_v32 = vcombine.low %v6351_v52, %v6352_v36  ;;  %v6364_v48 = vld [vmem:[#allocation14_spill] sm:$0xff]  ;;  %v6365_v50 = vld [vmem:[#allocation13_spill] sm:$0xff]  ;;  %v6367_v4 = vld [vmem:[#allocation28_spill] sm:$0xff] }
 0x21a   : > { %v3447_v43 = vcombine.low %v5999_v24, %v3445_v33  ;;  %v3642_v42 = vrot.slane %v6354_v59, %v5000_v49  ;;  %v3472_v22 = vcombine.low %v3147_v31, %v3470_v47  ;;  %v3668_v62 = vcombine.low %v6356_v20, %v6355_v11  ;;  %v6368_v3 = vld [vmem:[#allocation27_spill] sm:$0xff]  ;;  %v6369_v28 = vld [vmem:[#allocation17_spill] sm:$0xff] }
 0x21b   : > { %v3635_v63 = vrot.slane %v6353_v32, %v5000_v49  ;;  %v3437_v12 = vcombine.low %v3429_v16, %v3436_v30  ;;  %v3479_v15 = vrot.slane %v3471_v7, %v5000_v49  ;;  %v3677_v19 = vcombine.low %v6358_v1, %v6357_v44  ;;  %4496 = vmatmul.mubr.msk.f32.vlgmr.msra.gmra.mrb[0].mxu1 %vm2651_vm0, %v3337_v9  ;;  %v4028_v16 = vld [vmem:[%s6265_s5] sm:$0xff]  ;;  %v6371_v47 = vld [vmem:[#allocation29_spill] sm:$0xff]  ;;  %v6375_v20 = vld [vmem:[#allocation31_spill] sm:$0xff] }
 0x21c   : > { %v3461_v24 = vrot.slane %v3447_v43, %v5000_v49  ;;  %v6360_v21 = vrot.slane %v6359_v6, %v5000_v49  ;;  %v3486_v40 = vrot.slane %v3472_v22, %v5000_v49  ;;  %v3702_v31 = vcombine.low %v6363_v41, %v6362_v17  ;;  %4508 = vmatpush3.msra.mxu1 %v6003_v14  ;;  %v4029_v14 = vld [vmem:[%s6265_s5 + $0x8] sm:$0xff]  ;;  %v4035_v1 = vld [vmem:[%s6265_s5 + $0x38] sm:$0xff]  ;;  %v4036_v6 = vld [vmem:[%s6265_s5 + $0x40] sm:$0xff] }
 0x21d   : > { %v3643_v45 = vcombine.low %v3635_v63, %v3642_v42  ;;  %v3703_v10 = vcombine.low %v6365_v50, %v6364_v48  ;;  %v3685_v27 = vrot.slane %v3677_v19, %v5000_v49  ;;  %v3726_v25 = vrot.slane %v6366_v60, %v5000_v49  ;;  %4498 = vmatprep.mubr.msk.f32.mxu1 %vm2651_vm0, %v3362_v29  ;;  %v4040_v17 = vld [vmem:[%s6265_s5 + $0x60] sm:$0xff]  ;;  %v4041_v41 = vld [vmem:[%s6265_s5 + $0x68] sm:$0xff]  ;;  %v4042_v48 = vld [vmem:[%s6265_s5 + $0x70] sm:$0xff] }
 0x21e   : > { %v3678_v54 = vcombine.low %v6361_v23, %v6360_v21  ;;  %v3462_v0 = vcombine.low %v3454_v57, %v3461_v24  ;;  %v3727_v46 = vcombine.low %v6368_v3, %v6367_v4  ;;  %v3487_v58 = vcombine.low %v3479_v15, %v3486_v40  ;;  %v4037_v21 = vld [vmem:[%s6265_s5 + $0x48] sm:$0xff]  ;;  %v4043_v50 = vld [vmem:[%s6265_s5 + $0x78] sm:$0xff]  ;;  %v3971_v4 = vld [vmem:[%s6264_s4] sm:$0xff] }
 0x21f   : > { %v3710_v37 = vrot.slane %v3702_v31, %v5000_v49  ;;  %v3717_v2 = vrot.slane %v3703_v10, %v5000_v49  ;;  %v3728_v34 = vcombine.low %v6369_v28, %v3726_v25  ;;  %v3752_v33 = vcombine.low %v5820_v55, %v5826_v26  ;;  %4499 = vmatmul.mubr.msk.f32.gmra.mrb[2].mxu1 %vm2651_vm0, %v3387_v38 }
 0x220   : > { %v3692_v35 = vrot.slane %v3678_v54, %v5000_v49  ;;  %v3753_v30 = vcombine.low %v5842_v56, %v6370_v53  ;;  %v3777_v43 = vcombine.low %v5878_v39, %v5867_v5  ;;  %v6372_v57 = vrot.slane %v6371_v47, %v5000_v49  ;;  %v4030_v56 = vld [vmem:[%s6265_s5 + $0x10] sm:$0xff]  ;;  %v4031_v5 = vld [vmem:[%s6265_s5 + $0x18] sm:$0xff]  ;;  %4501 = vmatprep.mubr.msk.f32.mxu1 %vm2651_vm0, %v3412_v18  ;;  %v6374_v18 = vld [vmem:[#allocation30_spill] sm:$0xff] }
 0x221   : > { %v3718_v29 = vcombine.low %v3710_v37, %v3717_v2  ;;  %v3735_v26 = vrot.slane %v3727_v46, %v5000_v49  ;;  %v3742_v7 = vrot.slane %v3728_v34, %v5000_v49  ;;  %v3760_v52 = vrot.slane %v3752_v33, %v5000_v49  ;;  %v4038_v54 = vld [vmem:[%s6265_s5 + $0x50] sm:$0xff] }
 0x222   : > { %v3693_v9 = vcombine.low %v3685_v27, %v3692_v35  ;;  %v3778_v55 = vcombine.low %v5870_v61, %v6372_v57  ;;  %v3767_v61 = vrot.slane %v3753_v30, %v5000_v49  ;;  %v3785_v39 = vrot.slane %v3777_v43, %v5000_v49  ;;  %v4314_v27 = vld [vmem:[%s6263_s3] ss:$0 sm:$0xff] }
 0x223   : > { %v4581_v36 = vpack.c.bf16 %v4029_v14, %v4028_v16  ;;  %v3743_v32 = vcombine.low %v3735_v26, %v3742_v7  ;;  %v4584_v42 = vpack.c.bf16 %v4031_v5, %v4030_v56  ;;  %4502 = vmatmul.mubr.msk.f32.gmra.mrb[4].mxu1 %vm2651_vm0, %v3437_v12  ;;  %v6373_v24 = vmov 0.0|0.0  }
 0x224   : > { %v3792_v38 = vrot.slane %v3778_v55, %v5000_v49  ;;  %v3768_v63 = vcombine.low %v3760_v52, %v3767_v61  ;;  %4504 = vmatprep.mubr.msk.f32.mxu1 %vm2651_vm0, %v3462_v0  ;;  %v4305_v22 = vcombine.high %v6374_v18, %v5833_v8  ;;  %v3802_v8 = vcombine.low %v6375_v20, %v5881_v13  ;;  %v4033_v13 = vld [vmem:[%s6265_s5 + $0x28] sm:$0xff]  ;;  %v4039_v0 = vld [vmem:[%s6265_s5 + $0x58] sm:$0xff] }
 0x225   : > { %4582 = vmatpush3.bf16.msra.mxu0 %v4581_v36  ;;  %v4593_v23 = vpack.c.bf16 %v4037_v21, %v4036_v6  ;;  %v4596_v40 = vpack.c.bf16 %v4039_v0, %v4038_v54  ;;  %v4599_v31 = vpack.c.bf16 %v4041_v41, %v4040_v17  ;;  %v4602_v10 = vpack.c.bf16 %v4043_v50, %v4042_v48 }
 0x226   : > { %v3793_v59 = vcombine.low %v3785_v39, %v3792_v38  ;;  %4583 = vmatprep.subr.bf16.mxu0 %v6373_v24  ;;  %v3801_v11 = vrot.slane %v4305_v22, %v5000_v49 }
 0x227   : > { %4505 = vmatmul.mubr.msk.f32.gmra.mrb[6].mxu1 %vm2651_vm0, %v3487_v58 }
 0x228   : > { %4509 = vmatprep.mubr.msk.f32.mxu1 %vm2651_vm0, %v3643_v45  ;;  %v3803_v12 = vcombine.low %v5886_v51, %v3801_v11  ;;  %v3810_v45 = vrot.slane %v3802_v8, %v5000_v49  ;;  %v4032_v51 = vld [vmem:[%s6265_s5 + $0x20] sm:$0xff] }
 0x229   : > { %4585 = vmatpush3.bf16.msra.mxu0 %v4584_v42  ;;  %v4587_v44 = vpack.c.bf16 %v4033_v13, %v4032_v51 }
 0x22a   : > { %4586 = vmatprep.subr.bf16.mxu0 %v6373_v24  ;;  %v3817_v15 = vrot.slane %v3803_v12, %v5000_v49  ;;  %v4034_v49 = vld [vmem:[%s6265_s5 + $0x30] sm:$0xff] }
 0x22b   : > { %4510 = vmatmul.mubr.msk.f32.vlgmr.msra.gmra.mrb[0].mxu1 %vm2651_vm0, %v3668_v62  ;;  %v4590_v19 = vpack.c.bf16 %v4035_v1, %v4034_v49 }
 0x22c   : > { %4512 = vmatprep.mubr.msk.f32.mxu1 %vm2651_vm0, %v3693_v9  ;;  %v3818_v62 = vcombine.low %v3810_v45, %v3817_v15 }
 0x22d   : > { %4588 = vmatpush3.bf16.msra.mxu0 %v4587_v44 }
 0x22e   : > { %4589 = vmatprep.subr.bf16.mxu0 %v6373_v24 }
 0x22f   : > { %4513 = vmatmul.mubr.msk.f32.gmra.mrb[2].mxu1 %vm2651_vm0, %v3718_v29 }
 0x230   : > { %4515 = vmatprep.mubr.msk.f32.mxu1 %vm2651_vm0, %v3743_v32 }
 0x231   : > { %4591 = vmatpush3.bf16.msra.mxu0 %v4590_v19 }
 0x232   : > { %4592 = vmatprep.subr.bf16.mxu0 %v6373_v24 }
 0x233   : > { %4516 = vmatmul.mubr.msk.f32.gmra.mrb[4].mxu1 %vm2651_vm0, %v3768_v63 }
 0x234   : > { %4518 = vmatprep.mubr.msk.f32.mxu1 %vm2651_vm0, %v3793_v59 }
 0x235   : > { %4594 = vmatpush3.bf16.msra.mxu0 %v4593_v23 }
 0x236   : > { %4595 = vmatprep.subr.bf16.mxu0 %v6373_v24 }
 0x237   : > { %4519 = vmatmul.mubr.msk.f32.gmra.mrb[6].mxu1 %vm2651_vm0, %v3818_v62 }
 0x239   : > { %4597 = vmatpush3.bf16.msra.mxu0 %v4596_v40 }
 0x23a   : > { %4598 = vmatprep.subr.bf16.mxu0 %v6373_v24 }
 0x23d   : > { %4600 = vmatpush3.bf16.msra.mxu0 %v4599_v31 }
 0x23e   : > { %4601 = vmatprep.subr.bf16.mxu0 %v6373_v24 }
 0x241   : > { %4603 = vmatpush3.bf16.msra.mxu0 %v4602_v10 }
 0x2fe   : > { %v4511_v35 = vpop.f32.mrb[0].mxu1 }
 0x2ff   : > { %v3956_v60 = vadd.f32 %v4511_v35, %v4314_v27  ;;  %v3901_v25 = vpop.f32.mrb[1].mxu1 }
 0x300   : > { %v3955_v3 = vadd.f32 %v4314_v27, %v3901_v25 }
 0x301   : > { %v3964_v46 = vmax.f32 %v3956_v60, 0.0 }
 0x302   : > { %v3963_v58 = vmax.f32 %v3955_v3, 0.0  ;;  %v4514_v37 = vpop.f32.mrb[2].mxu1 }
 0x303   : > { %v3973_v2 = vadd.f32 %v3971_v4, %v3964_v46  ;;  %v3958_v9 = vadd.f32 %v4514_v37, %v4314_v27  ;;  %v3911_v28 = vpop.f32.mrb[3].mxu1 }
 0x304   : > { %v3972_v34 = vadd.f32 %v3971_v4, %v3963_v58  ;;  %v3957_v33 = vadd.f32 %v4314_v27, %v3911_v28 }
 0x305   : > { %v3986_v16 = vrot.slane %v3973_v2, 4  ;;  %v3966_v14 = vmax.f32 %v3958_v9, 0.0 }
 0x306   : > { %v3980_v29 = vrot.slane %v3972_v34, 4  ;;  %v3965_v53 = vmax.f32 %v3957_v33, 0.0  ;;  %v4517_v30 = vpop.f32.mrb[4].mxu1 }
 0x307   : > { %v3987_v43 = vmax.f32 %v3973_v2, %v3986_v16  ;;  %v3975_v47 = vadd.f32 %v3971_v4, %v3966_v14  ;;  %v3960_v57 = vadd.f32 %v4517_v30, %v4314_v27  ;;  %v3921_v55 = vpop.f32.mrb[5].mxu1 }
 0x308   : > { %v3981_v26 = vmax.f32 %v3972_v34, %v3980_v29  ;;  %v3974_v7 = vadd.f32 %v3971_v4, %v3965_v53  ;;  %v3959_v52 = vadd.f32 %v4314_v27, %v3921_v55 }
 0x309   : > { %v3988_v56 = vrot.slane %v3987_v43, 2  ;;  %v3998_v5 = vrot.slane %v3975_v47, 4  ;;  %v3968_v61 = vmax.f32 %v3960_v57, 0.0 }
 0x30a   : > { %v3982_v39 = vrot.slane %v3981_v26, 2  ;;  %v3992_v38 = vrot.slane %v3974_v7, 4  ;;  %v3967_v36 = vmax.f32 %v3959_v52, 0.0  ;;  %v4520_v32 = vpop.f32.mrb[6].mxu1  ;;  %v4315_v52 = vld [vmem:[%s6266_s6] ss:$0 sm:$0xff] }
 0x30b   : > { %v3989_v63 = vmax.f32 %v3987_v43, %v3988_v56  ;;  %v3999_v59 = vmax.f32 %v3975_v47, %v3998_v5  ;;  %v3977_v42 = vadd.f32 %v3971_v4, %v3968_v61  ;;  %v3962_v24 = vadd.f32 %v4520_v32, %v4314_v27  ;;  %v3931_v18 = vpop.f32.mrb[7].mxu1 }
 0x30c   : > { %v3983_v22 = vmax.f32 %v3981_v26, %v3982_v39  ;;  %v3993_v11 = vmax.f32 %v3974_v7, %v3992_v38  ;;  %v3976_v12 = vadd.f32 %v3971_v4, %v3967_v36  ;;  %v3961_v20 = vadd.f32 %v4314_v27, %v3931_v18 }
 0x30d   : > { %v3990_v8 = vrot.slane %v3989_v63, 1  ;;  %v4000_v15 = vrot.slane %v3999_v59, 2  ;;  %v4010_v45 = vrot.slane %v3977_v42, 4  ;;  %v3970_v62 = vmax.f32 %v3962_v24, 0.0 }
 0x30e   : > { %v3984_v51 = vrot.slane %v3983_v22, 1  ;;  %v3994_v13 = vrot.slane %v3993_v11, 2  ;;  %v4004_v44 = vrot.slane %v3976_v12, 4  ;;  %v3969_v49 = vmax.f32 %v3961_v20, 0.0 }
 0x30f   : > { %v3991_v1 = vmax.f32 %v3989_v63, %v3990_v8  ;;  %v4001_v19 = vmax.f32 %v3999_v59, %v4000_v15  ;;  %v4011_v6 = vmax.f32 %v3977_v42, %v4010_v45  ;;  %v3979_v21 = vadd.f32 %v3971_v4, %v3970_v62 }
 0x310   : > { %v3985_v23 = vmax.f32 %v3983_v22, %v3984_v51  ;;  %v3995_v54 = vmax.f32 %v3993_v11, %v3994_v13  ;;  %v4005_v0 = vmax.f32 %v3976_v12, %v4004_v44  ;;  %v3978_v40 = vadd.f32 %v3971_v4, %v3969_v49 }
 0x311   : > { %v4002_v17 = vrot.slane %v4001_v19, 1  ;;  %v4012_v41 = vrot.slane %v4011_v6, 2  ;;  %v4022_v31 = vrot.slane %v3979_v21, 4 }
 0x312   : > { %v4060_v48 = vsel %vm4059_vm2, %v3991_v1, %v3985_v23  ;;  %v3996_v50 = vrot.slane %v3995_v54, 1  ;;  %v4006_v10 = vrot.slane %v4005_v0, 2  ;;  %v4016_v27 = vrot.slane %v3978_v40, 4 }
 0x313   : > { %v4013_v35 = vmax.f32 %v4011_v6, %v4012_v41  ;;  %v4023_v60 = vmax.f32 %v3979_v21, %v4022_v31  ;;  %v4003_v58 = vmax.f32 %v4001_v19, %v4002_v17 }
 0x314   : > { %v3997_v25 = vmax.f32 %v3995_v54, %v3996_v50  ;;  %v4007_v3 = vmax.f32 %v4005_v0, %v4006_v10  ;;  %v4017_v46 = vmax.f32 %v3978_v40, %v4016_v27 }
 0x315   : > { %v4014_v37 = vrot.slane %v4013_v35, 1  ;;  %v4024_v2 = vrot.slane %v4023_v60, 2 }
 0x316   : > { %v4062_v9 = vsel %vm4061_vm3, %v3997_v25, %v4060_v48  ;;  %v4008_v4 = vrot.slane %v4007_v3, 1  ;;  %v4018_v28 = vrot.slane %v4017_v46, 2 }
 0x317   : > { %v4025_v34 = vmax.f32 %v4023_v60, %v4024_v2  ;;  %v4064_v33 = vsel %vm4063_vm4, %v4003_v58, %v4062_v9  ;;  %v4015_v29 = vmax.f32 %v4013_v35, %v4014_v37 }
 0x318   : > { %v4009_v16 = vmax.f32 %v4007_v3, %v4008_v4  ;;  %v4019_v14 = vmax.f32 %v4017_v46, %v4018_v28 }
 0x319   : > { %v4026_v53 = vrot.slane %v4025_v34, 1 }
 0x31a   : > { %v4020_v30 = vrot.slane %v4019_v14, 1  ;;  %v4066_v43 = vsel %vm4065_vm5, %v4009_v16, %v4064_v33 }
 0x31b   : > { %v4068_v47 = vsel %vm4067_vm6, %v4015_v29, %v4066_v43  ;;  %v4027_v55 = vmax.f32 %v4025_v34, %v4026_v53 }
 0x31c   : > { %v4021_v57 = vmax.f32 %v4019_v14, %v4020_v30 }
 0x31e   : > { %v4070_v26 = vsel %vm4069_vm7, %v4021_v57, %v4068_v47 }
 0x31f   : > { %v4072_v7 = vsel %vm4071_vm8, %v4027_v55, %v4070_v26 }
 0x320   : > { %4554 = vmatmul.mubr.f32.vlgmr.msra.gmra.mrb[22].mxu0 %v4072_v7 }
 0x3f3   : > { %v4140_v56 = vpop.f32.mrb[22].mxu0 }
 0x3f4   : > { %v4141_v5 = vadd.f32 %v4315_v52, %v4140_v56  ;;  %v4555_v61 = vpop.f32.mrb[23].mxu0 }
 0x3f6   : > { %4144 = vst [vmem:[%s284_s23] sm:$0xff] %v4141_v5 }
 0x3f7   : > { %4725 = shalt.err (!%p4722_p7)
}
 0x3f8   : > { %s4726_s18 = scalar_lea.hbm %s6218_s14, 128  ;;  %s4730_s21 = scalar_lea.hbm %s6267_s7, 256 }
 0x3f9   : > { %p4727_p8 = scmp.ne.s32.totalorder %s6218_s14, %s4726_s18  ;;  %p4731_p1 = scmp.lt.u32.totalorder %s6218_s14, %s6267_s7 }
 0x3fa   : > { %p4732_p0 = scmp.lt.u32.totalorder %s4730_s21, %s4726_s18  ;;  %p4734_p6 = scmp.lt.u32.totalorder %s4726_s18, %s6218_s14 }
 0x3fb   : > { %p4728_p11 = pnand %p4727_p8, %p6376_p9 }
 0x3fc   : > { %p4733_p5 = por %p4732_p0, %p4731_p1 }
 0x3fd   : > { %p4729_p13 = pneg %p4728_p11 }
 0x3fe   : > { %p4735_p10 = por %p4734_p6, %p4733_p5 }
 0x400   : > { %p4736_p12 = pnand %p4735_p10, %p4729_p13 }
 0x402   : > { %4739 = shalt.err (!%p4736_p12)
}
 0x403   : > { %4632 = dma.vmem_to_hbm [thread:$0]  (%p6376_p9), %s6220_s29, 128, %s6218_s14, %s4146_s17  }
 0x404 PF: > { %p4644_p2 = scmp.ge.s32.totalorder %s4778_s27, 2  ;;  %s4171_s8 = sand.u32 1, %s4766_s24  }
 0x405   : > { %p6377_p3 = scmp.ne.s32.totalorder %s6291_s12, 0  ;;  %s4172_s9 = scalar_lea.sflag [#allocation4], %s4171_s8 }
 0x407   : > { %p4639_p4 = pnand %p4644_p2, %p6377_p3 }
 0x409   : > { %4761 = dma.done.wait (!%p4639_p4), %s4172_s9, 128  }
 0x40a   : > { %4763 = vsyncadd (!%p4639_p4), %s4172_s9, 4294967168  ;;  %p18_p7 = scmp.ge.s32.totalorder %s4853_s30, 4   ;;  %s6378_s24 = smov %s4770_s25 }
 0x40b   : > { %s6379_s25 = smov %s4774_s26  ;;  %s6380_s26 = smov %s4864_s10 }
 0x40c   : > { %s6381_s27 = smov %s4853_s30  ;;  %20 = sbr.rel (!%p18_p7) target bundleno = 4 (0x4), region = 91 }
 0x413   :  { %4177 = vsyncpa [#allocation3], 1 }
 0x414   :  { %4179 = vsyncpa [#allocation3 + $0x1], 1 }
 0x415   :  { %4180 = vsyncpa [#allocation4], 1 }
 0x416   :  { %4182 = vsyncpa [#allocation4 + $0x1], 1 }

</bundles_post_ra>
